<compile_context>
chip_gen: v6e
topology: v6e:2x2x1
jax: 0.10.0
libtpu: 0.0.40
codegen_flags: <defaults>
</compile_context>

<pallas_src>
import functools

import jax
import jax.numpy as jnp
from jax import lax
from jax.experimental import pallas as pl
from jax.experimental.pallas import tpu as pltpu


def _swa_kernel(x_ref, row_ref, col_ref, woff_ref, boff_ref, wdef_ref,
                scale_ref, shift_ref, o_ref,
                offy_scr, offx_scr, z_scr, *, H, W, ksz):
    """One batch element per grid step.

    x_ref:     (1, C, HW)  input, channels on sublanes, pixels on lanes
    row_ref:   (1, HW)     int32 row index of every output pixel
    col_ref:   (1, HW)     int32 col index of every output pixel
    woff_ref:  (2K, K*C)   offset-conv weight, im2col column order k*C + c
    boff_ref:  (2K, 1)     offset-conv bias
    wdef_ref:  (K*C, C)    deformable-conv weight, rows [k*C:(k+1)*C] = w[:, :, k]
    scale_ref: (C, 1)      folded BN scale  = gamma / sqrt(var + eps)
    shift_ref: (C, 1)      folded BN shift  = beta - mean * scale
    o_ref:     (1, C, HW)  output
    offy_scr:  (K, 1, HW)  scratch: per-tap sampling-row offset (tap dy folded in)
    offx_scr:  (K, 1, HW)  scratch: per-tap sampling-col offset (tap dx folded in)
    z_scr:     (K, C, HW)  scratch: per-tap  w_def[:, :, k] @ x
    """
    C = x_ref.shape[1]
    HW = x_ref.shape[2]
    K = ksz * ksz
    pad = ksz // 2

    x = x_ref[0]                                              # (C, HW) f32
    row_i = row_ref[...]                                      # (1, HW) int32
    col_i = col_ref[...]
    row_f = row_i.astype(jnp.float32)
    col_f = col_i.astype(jnp.float32)

    # ---- 1) offset conv: masked lane shifts -> im2col -> ONE matmul --------
    # A static tap shift (dy, dx) with zero padding is a lane roll of x masked
    # by the in-bounds vector (wrapped-around values land on masked-out pixels).
    slabs = []
    for k in range(K):
        dy = k // ksz - pad
        dx = k % ksz - pad
        d = dy * W + dx
        valid = ((row_i + dy >= 0) & (row_i + dy < H) &
                 (col_i + dx >= 0) & (col_i + dx < W))        # (1, HW)
        xs = x if d == 0 else jnp.roll(x, -d, axis=1)         # (C, HW)
        slabs.append(jnp.where(valid, xs, 0.0))
    im2col = jnp.concatenate(slabs, axis=0)                   # (K*C, HW)
    off = jnp.dot(woff_ref[...], im2col,
                  preferred_element_type=jnp.float32) + boff_ref[...]   # (2K, HW)

    # ---- 2) deformable conv -------------------------------------------------
    # 2a) fuse all per-tap weight matmuls into one (K*C, C) @ (C, HW).
    z_all = jnp.dot(wdef_ref[...], x, preferred_element_type=jnp.float32)

    # 2b) stage per-tap data with static stores (tap index on the leading dim)
    #     so the tap loop can be a fori_loop with bounded live ranges.
    for k in range(K):
        dy = k // ksz - pad
        dx = k % ksz - pad
        offy_scr[k] = off[2 * k:2 * k + 1, :] + float(dy)
        offx_scr[k] = off[2 * k + 1:2 * k + 2, :] + float(dx)
        z_scr[k] = z_all[k * C:(k + 1) * C, :]

    q_iota = lax.broadcasted_iota(jnp.int32, (HW, HW), 0)     # source pixel q

    def tap_body(k, y):
        # Bilinear gather as a sparse (HW, HW) selection matrix contracted on
        # the MXU.  Per-corner weights are zeroed when out of bounds, so one
        # delta/select chain against the 4 static corner deltas suffices.
        py = row_f + offy_scr[k]                              # (1, HW)
        px = col_f + offx_scr[k]
        fy0 = jnp.floor(py)
        fx0 = jnp.floor(px)
        ry = py - fy0
        rx = px - fx0
        iy0 = fy0.astype(jnp.int32)
        ix0 = fx0.astype(jnp.int32)

        vy0 = (iy0 >= 0) & (iy0 < H)
        vy1 = (iy0 >= -1) & (iy0 < H - 1)
        vx0 = (ix0 >= 0) & (ix0 < W)
        vx1 = (ix0 >= -1) & (ix0 < W - 1)
        w00 = jnp.where(vy0 & vx0, (1.0 - ry) * (1.0 - rx), 0.0)
        w01 = jnp.where(vy0 & vx1, (1.0 - ry) * rx, 0.0)
        w10 = jnp.where(vy1 & vx0, ry * (1.0 - rx), 0.0)
        w11 = jnp.where(vy1 & vx1, ry * rx, 0.0)

        delta = q_iota - (iy0 * W + ix0)                      # (HW, HW)
        mt = jnp.where(delta == 0, w00,
             jnp.where(delta == 1, w01,
             jnp.where(delta == W, w10,
             jnp.where(delta == W + 1, w11, 0.0))))           # (HW, HW)

        return y + jnp.dot(z_scr[k], mt, preferred_element_type=jnp.float32)

    y = lax.fori_loop(0, K, tap_body, jnp.zeros((C, HW), jnp.float32))

    # ---- 3) BatchNorm (eval-mode, folded) + sigmoid gate --------------------
    y = y * scale_ref[...] + shift_ref[...]
    o_ref[0] = (x * jax.nn.sigmoid(y)).astype(o_ref.dtype)
    # TODO(synk): train-mode BatchNorm (batch statistics + running-stat update)
    # is not implemented; this is the eval-mode forward.
    # TODO(synk): for realistic spatial sizes (HW >= 2048) the output-pixel axis
    # should be tiled (extra grid axis) so the (HW, HW) selection matrix becomes
    # (HW, Tp) and fits v7x's 64 MiB VMEM; unnecessary at HW = 256.


def spatial_window_attn(x, w_off, b_off, w_def, gamma, beta,
                        running_mean, running_var, *, eps=1e-5):
    """x: (B, C, H, W).  w_off: (2*K, C, k, k), b_off: (2*K,),
    w_def: (C, C, k, k).  BN params: (C,).  Returns (B, C, H, W)."""
    B, C, H, W = x.shape
    two_k, c_in, kh, kw = w_off.shape
    assert c_in == C and kh == kw
    ksz = kh
    K = ksz * ksz
    assert two_k == 2 * K
    assert w_def.shape == (C, C, ksz, ksz)
    HW = H * W

    # Lane-dense layout: channels on sublanes, H*W on lanes. No transposes.
    x3 = x.reshape(B, C, HW)

    # im2col weight layout: column index = tap * C + channel.
    w_off_flat = jnp.transpose(w_off.reshape(2 * K, C, K), (0, 2, 1)) \
                    .reshape(2 * K, K * C).astype(jnp.float32)
    b_off2 = b_off.reshape(2 * K, 1).astype(jnp.float32)
    # Tap-major deform weight: rows [k*C:(k+1)*C] = w_def[:, :, k].
    w_def_flat = jnp.transpose(w_def.reshape(C, C, K), (2, 0, 1)) \
                    .reshape(K * C, C).astype(jnp.float32)

    inv_std = 1.0 / jnp.sqrt(running_var + eps)
    scale = (gamma * inv_std).reshape(C, 1).astype(jnp.float32)
    shift = (beta - running_mean * gamma * inv_std).reshape(C, 1).astype(jnp.float32)

    # Per-pixel row/col indices, precomputed once (keeps int div/mod out of the kernel).
    pix = jnp.arange(HW, dtype=jnp.int32)
    row_idx = (pix // W).reshape(1, HW)
    col_idx = (pix % W).reshape(1, HW)

    kernel = functools.partial(_swa_kernel, H=H, W=W, ksz=ksz)

    # Updated cost estimate: MXU work = im2col matmul + fused tap-weight matmul
    # + K (C, HW) @ (HW, HW) contractions; VPU work ~ K * 9 full (HW, HW)
    # passes for the delta/select build.
    mxu_flops = B * (2 * (2 * K) * (K * C) * HW
                     + 2 * (K * C) * C * HW
                     + K * 2 * C * HW * HW)
    vpu_flops = B * K * 9 * HW * HW
    cost = pl.CostEstimate(
        flops=int(mxu_flops + vpu_flops),
        transcendentals=int(B * C * HW),
        bytes_accessed=int(4 * (2 * x3.size + w_off.size + b_off.size
                                + w_def.size + 4 * C + 2 * HW)),
    )

    out3 = pl.pallas_call(
        kernel,
        out_shape=jax.ShapeDtypeStruct((B, C, HW), x.dtype),
        grid_spec=pltpu.PrefetchScalarGridSpec(
            num_scalar_prefetch=0,
            grid=(B,),
            in_specs=[
                pl.BlockSpec((1, C, HW), lambda b: (b, 0, 0)),      # x
                pl.BlockSpec((1, HW), lambda b: (0, 0)),            # row idx
                pl.BlockSpec((1, HW), lambda b: (0, 0)),            # col idx
                pl.BlockSpec((2 * K, K * C), lambda b: (0, 0)),     # w_off (im2col)
                pl.BlockSpec((2 * K, 1), lambda b: (0, 0)),         # b_off
                pl.BlockSpec((K * C, C), lambda b: (0, 0)),         # w_def (tap-major)
                pl.BlockSpec((C, 1), lambda b: (0, 0)),             # bn scale
                pl.BlockSpec((C, 1), lambda b: (0, 0)),             # bn shift
            ],
            out_specs=pl.BlockSpec((1, C, HW), lambda b: (b, 0, 0)),
            scratch_shapes=[
                pltpu.VMEM((K, 1, HW), jnp.float32),   # per-tap sampling rows
                pltpu.VMEM((K, 1, HW), jnp.float32),   # per-tap sampling cols
                pltpu.VMEM((K, C, HW), jnp.float32),   # per-tap w_def @ x
            ],
        ),
        compiler_params=pltpu.CompilerParams(
            dimension_semantics=("parallel",),
            vmem_limit_bytes=32 * 1024 * 1024,
        ),
        cost_estimate=cost,
    )(x3, row_idx, col_idx, w_off_flat, b_off2, w_def_flat, scale, shift)

    return out3.reshape(B, C, H, W)


def _reference(x, w_off, b_off, w_def, gamma, beta, r_mean, r_var, eps=1e-5):
    """Pure-JAX reference of the same forward pass (no Pallas)."""
    B, C, H, W = x.shape
    ksz = w_off.shape[-1]
    pad = ksz // 2
    K = ksz * ksz

    off = lax.conv_general_dilated(
        x, w_off, window_strides=(1, 1), padding=((pad, pad), (pad, pad)),
        dimension_numbers=("NCHW", "OIHW", "NCHW")) + b_off[None, :, None, None]

    rows = jnp.arange(H, dtype=jnp.float32)[:, None]      # (H, 1)
    cols = jnp.arange(W, dtype=jnp.float32)[None, :]      # (1, W)
    b_idx = jnp.arange(B)[:, None, None, None]
    c_idx = jnp.arange(C)[None, :, None, None]

    y = jnp.zeros((B, C, H, W), jnp.float32)
    for k in range(K):
        dy = k // ksz - pad
        dx = k % ksz - pad
        py = rows + dy + off[:, 2 * k]                      # (B, H, W)
        px = cols + dx + off[:, 2 * k + 1]
        iy0 = jnp.floor(py)
        ix0 = jnp.floor(px)
        ry = py - iy0
        rx = px - ix0
        iy0 = iy0.astype(jnp.int32)
        ix0 = ix0.astype(jnp.int32)
        sampled = jnp.zeros((B, C, H, W), jnp.float32)
        for ddy in (0, 1):
            for ddx in (0, 1):
                cy = iy0 + ddy
                cx = ix0 + ddx
                wgt = (ry if ddy else 1.0 - ry) * (rx if ddx else 1.0 - rx)
                valid = (cy >= 0) & (cy < H) & (cx >= 0) & (cx < W)
                cyc = jnp.clip(cy, 0, H - 1)
                cxc = jnp.clip(cx, 0, W - 1)
                v = x[b_idx, c_idx, cyc[:, None], cxc[:, None]]   # (B, C, H, W)
                sampled = sampled + jnp.where(valid[:, None], wgt[:, None], 0.0) * v
        y = y + jnp.einsum("oc,bchw->bohw", w_def[:, :, k // ksz, k % ksz], sampled)

    y = (y - r_mean[None, :, None, None]) / jnp.sqrt(r_var[None, :, None, None] + eps)
    y = y * gamma[None, :, None, None] + beta[None, :, None, None]
    return x * jax.nn.sigmoid(y)


if __name__ == "__main__":
    B, C, H, W = 2, 4, 16, 16
    ksz = 3
    K = ksz * ksz

    key = jax.random.PRNGKey(0)
    ks = jax.random.split(key, 8)
    x = jax.random.normal(ks[0], (B, C, H, W), dtype=jnp.float32)
    w_off = 0.1 * jax.random.normal(ks[1], (2 * K, C, ksz, ksz), dtype=jnp.float32)
    b_off = 0.1 * jax.random.normal(ks[2], (2 * K,), dtype=jnp.float32)
    w_def = jax.random.normal(ks[3], (C, C, ksz, ksz), dtype=jnp.float32) / float((C * K) ** 0.5)
    gamma = 1.0 + 0.1 * jax.random.normal(ks[4], (C,), dtype=jnp.float32)
    beta = 0.1 * jax.random.normal(ks[5], (C,), dtype=jnp.float32)
    r_mean = 0.1 * jax.random.normal(ks[6], (C,), dtype=jnp.float32)
    r_var = 1.0 + 0.1 * jnp.abs(jax.random.normal(ks[7], (C,), dtype=jnp.float32))

    fn = jax.jit(spatial_window_attn)
    out = jax.block_until_ready(fn(x, w_off, b_off, w_def, gamma, beta, r_mean, r_var))

    ref = _reference(x, w_off, b_off, w_def, gamma, beta, r_mean, r_var)
    assert out.shape == (B, C, H, W)
    err = float(jnp.max(jnp.abs(out - ref)))
    assert err < 1e-4, f"max abs error {err}"
    print("KERNEL_OK")
</pallas_src>

<mosaic_0001>
module attributes {stable_mosaic.version = 11 : i64} {
  func.func @_swa_kernel(%arg0: i32, %arg1: memref<1x4x256xf32, #tpu.memory_space<vmem>>, %arg2: memref<1x256xi32, #tpu.memory_space<vmem>>, %arg3: memref<1x256xi32, #tpu.memory_space<vmem>>, %arg4: memref<18x36xf32, #tpu.memory_space<vmem>>, %arg5: memref<18x1xf32, #tpu.memory_space<vmem>>, %arg6: memref<36x4xf32, #tpu.memory_space<vmem>>, %arg7: memref<4x1xf32, #tpu.memory_space<vmem>>, %arg8: memref<4x1xf32, #tpu.memory_space<vmem>>, %arg9: memref<1x4x256xf32, #tpu.memory_space<vmem>>, %arg10: memref<9x1x256xf32, #tpu.memory_space<vmem>>, %arg11: memref<9x1x256xf32, #tpu.memory_space<vmem>>, %arg12: memref<9x4x256xf32, #tpu.memory_space<vmem>>) attributes {dimension_semantics = [#tpu.dimension_semantics<parallel>], iteration_bounds = array<i64: 2>, scalar_prefetch = 0 : i64, scratch_operands = 3 : i64, tpu.core_type = #tpu.core_type<tc>, window_params = [{transform_indices = @transform_0, window_bounds = array<i64: 1, 4, 256>}, {pipeline_mode = #tpu.pipeline_mode<synchronous>, transform_indices = @transform_1, window_bounds = array<i64: 1, 256>}, {pipeline_mode = #tpu.pipeline_mode<synchronous>, transform_indices = @transform_2, window_bounds = array<i64: 1, 256>}, {pipeline_mode = #tpu.pipeline_mode<synchronous>, transform_indices = @transform_3, window_bounds = array<i64: 18, 36>}, {pipeline_mode = #tpu.pipeline_mode<synchronous>, transform_indices = @transform_4, window_bounds = array<i64: 18, 1>}, {pipeline_mode = #tpu.pipeline_mode<synchronous>, transform_indices = @transform_5, window_bounds = array<i64: 36, 4>}, {pipeline_mode = #tpu.pipeline_mode<synchronous>, transform_indices = @transform_6, window_bounds = array<i64: 4, 1>}, {pipeline_mode = #tpu.pipeline_mode<synchronous>, transform_indices = @transform_7, window_bounds = array<i64: 4, 1>}, {transform_indices = @transform_8, window_bounds = array<i64: 1, 4, 256>}]} {
    %c0 = arith.constant 0 : index
    %c0_0 = arith.constant 0 : index
    %c0_1 = arith.constant 0 : index
    %0 = vector.load %arg1[%c0, %c0_0, %c0_1] : memref<1x4x256xf32, #tpu.memory_space<vmem>>, vector<1x4x256xf32>
    %1 = vector.shape_cast %0 : vector<1x4x256xf32> to vector<4x256xf32>
    %c0_2 = arith.constant 0 : index
    %c0_3 = arith.constant 0 : index
    %2 = vector.load %arg2[%c0_2, %c0_3] : memref<1x256xi32, #tpu.memory_space<vmem>>, vector<1x256xi32>
    %c0_4 = arith.constant 0 : index
    %c0_5 = arith.constant 0 : index
    %3 = vector.load %arg3[%c0_4, %c0_5] : memref<1x256xi32, #tpu.memory_space<vmem>>, vector<1x256xi32>
    %4 = arith.sitofp %2 : vector<1x256xi32> to vector<1x256xf32>
    %5 = arith.sitofp %3 : vector<1x256xi32> to vector<1x256xf32>
    %c-1_i32 = arith.constant -1 : i32
    %6 = vector.broadcast %c-1_i32 : i32 to vector<1x256xi32>
    %7 = arith.addi %2, %6 : vector<1x256xi32>
    %c0_i32 = arith.constant 0 : i32
    %8 = vector.broadcast %c0_i32 : i32 to vector<1x256xi32>
    %9 = arith.cmpi sge, %7, %8 : vector<1x256xi32>
    %c-1_i32_6 = arith.constant -1 : i32
    %10 = vector.broadcast %c-1_i32_6 : i32 to vector<1x256xi32>
    %11 = arith.addi %2, %10 : vector<1x256xi32>
    %c16_i32 = arith.constant 16 : i32
    %12 = vector.broadcast %c16_i32 : i32 to vector<1x256xi32>
    %13 = arith.cmpi slt, %11, %12 : vector<1x256xi32>
    %14 = arith.andi %9, %13 : vector<1x256xi1>
    %c-1_i32_7 = arith.constant -1 : i32
    %15 = vector.broadcast %c-1_i32_7 : i32 to vector<1x256xi32>
    %16 = arith.addi %3, %15 : vector<1x256xi32>
    %c0_i32_8 = arith.constant 0 : i32
    %17 = vector.broadcast %c0_i32_8 : i32 to vector<1x256xi32>
    %18 = arith.cmpi sge, %16, %17 : vector<1x256xi32>
    %19 = arith.andi %14, %18 : vector<1x256xi1>
    %c-1_i32_9 = arith.constant -1 : i32
    %20 = vector.broadcast %c-1_i32_9 : i32 to vector<1x256xi32>
    %21 = arith.addi %3, %20 : vector<1x256xi32>
    %c16_i32_10 = arith.constant 16 : i32
    %22 = vector.broadcast %c16_i32_10 : i32 to vector<1x256xi32>
    %23 = arith.cmpi slt, %21, %22 : vector<1x256xi32>
    %24 = arith.andi %19, %23 : vector<1x256xi1>
    %25 = vector.extract_strided_slice %1 {offsets = [0, 239], sizes = [4, 17], strides = [1, 1]} : vector<4x256xf32> to vector<4x17xf32>
    %26 = vector.extract_strided_slice %1 {offsets = [0, 0], sizes = [4, 239], strides = [1, 1]} : vector<4x256xf32> to vector<4x239xf32>
    %27 = tpu.concatenate %25, %26 in 1 : vector<4x17xf32>, vector<4x239xf32> -> vector<4x256xf32>
    %cst = arith.constant 0.000000e+00 : f32
    %28 = vector.shape_cast %24 : vector<1x256xi1> to vector<1x256xi1>
    %29 = vector.broadcast %28 : vector<1x256xi1> to vector<4x256xi1>
    %30 = vector.broadcast %cst : f32 to vector<4x256xf32>
    %31 = arith.select %29, %27, %30 : vector<4x256xi1>, vector<4x256xf32>
    %c-1_i32_11 = arith.constant -1 : i32
    %32 = vector.broadcast %c-1_i32_11 : i32 to vector<1x256xi32>
    %33 = arith.addi %2, %32 : vector<1x256xi32>
    %c0_i32_12 = arith.constant 0 : i32
    %34 = vector.broadcast %c0_i32_12 : i32 to vector<1x256xi32>
    %35 = arith.cmpi sge, %33, %34 : vector<1x256xi32>
    %c-1_i32_13 = arith.constant -1 : i32
    %36 = vector.broadcast %c-1_i32_13 : i32 to vector<1x256xi32>
    %37 = arith.addi %2, %36 : vector<1x256xi32>
    %c16_i32_14 = arith.constant 16 : i32
    %38 = vector.broadcast %c16_i32_14 : i32 to vector<1x256xi32>
    %39 = arith.cmpi slt, %37, %38 : vector<1x256xi32>
    %40 = arith.andi %35, %39 : vector<1x256xi1>
    %c0_i32_15 = arith.constant 0 : i32
    %41 = vector.broadcast %c0_i32_15 : i32 to vector<1x256xi32>
    %42 = arith.addi %3, %41 : vector<1x256xi32>
    %c0_i32_16 = arith.constant 0 : i32
    %43 = vector.broadcast %c0_i32_16 : i32 to vector<1x256xi32>
    %44 = arith.cmpi sge, %42, %43 : vector<1x256xi32>
    %45 = arith.andi %40, %44 : vector<1x256xi1>
    %c0_i32_17 = arith.constant 0 : i32
    %46 = vector.broadcast %c0_i32_17 : i32 to vector<1x256xi32>
    %47 = arith.addi %3, %46 : vector<1x256xi32>
    %c16_i32_18 = arith.constant 16 : i32
    %48 = vector.broadcast %c16_i32_18 : i32 to vector<1x256xi32>
    %49 = arith.cmpi slt, %47, %48 : vector<1x256xi32>
    %50 = arith.andi %45, %49 : vector<1x256xi1>
    %51 = vector.extract_strided_slice %1 {offsets = [0, 240], sizes = [4, 16], strides = [1, 1]} : vector<4x256xf32> to vector<4x16xf32>
    %52 = vector.extract_strided_slice %1 {offsets = [0, 0], sizes = [4, 240], strides = [1, 1]} : vector<4x256xf32> to vector<4x240xf32>
    %53 = tpu.concatenate %51, %52 in 1 : vector<4x16xf32>, vector<4x240xf32> -> vector<4x256xf32>
    %cst_19 = arith.constant 0.000000e+00 : f32
    %54 = vector.shape_cast %50 : vector<1x256xi1> to vector<1x256xi1>
    %55 = vector.broadcast %54 : vector<1x256xi1> to vector<4x256xi1>
    %56 = vector.broadcast %cst_19 : f32 to vector<4x256xf32>
    %57 = arith.select %55, %53, %56 : vector<4x256xi1>, vector<4x256xf32>
    %c-1_i32_20 = arith.constant -1 : i32
    %58 = vector.broadcast %c-1_i32_20 : i32 to vector<1x256xi32>
    %59 = arith.addi %2, %58 : vector<1x256xi32>
    %c0_i32_21 = arith.constant 0 : i32
    %60 = vector.broadcast %c0_i32_21 : i32 to vector<1x256xi32>
    %61 = arith.cmpi sge, %59, %60 : vector<1x256xi32>
    %c-1_i32_22 = arith.constant -1 : i32
    %62 = vector.broadcast %c-1_i32_22 : i32 to vector<1x256xi32>
    %63 = arith.addi %2, %62 : vector<1x256xi32>
    %c16_i32_23 = arith.constant 16 : i32
    %64 = vector.broadcast %c16_i32_23 : i32 to vector<1x256xi32>
    %65 = arith.cmpi slt, %63, %64 : vector<1x256xi32>
    %66 = arith.andi %61, %65 : vector<1x256xi1>
    %c1_i32 = arith.constant 1 : i32
    %67 = vector.broadcast %c1_i32 : i32 to vector<1x256xi32>
    %68 = arith.addi %3, %67 : vector<1x256xi32>
    %c0_i32_24 = arith.constant 0 : i32
    %69 = vector.broadcast %c0_i32_24 : i32 to vector<1x256xi32>
    %70 = arith.cmpi sge, %68, %69 : vector<1x256xi32>
    %71 = arith.andi %66, %70 : vector<1x256xi1>
    %c1_i32_25 = arith.constant 1 : i32
    %72 = vector.broadcast %c1_i32_25 : i32 to vector<1x256xi32>
    %73 = arith.addi %3, %72 : vector<1x256xi32>
    %c16_i32_26 = arith.constant 16 : i32
    %74 = vector.broadcast %c16_i32_26 : i32 to vector<1x256xi32>
    %75 = arith.cmpi slt, %73, %74 : vector<1x256xi32>
    %76 = arith.andi %71, %75 : vector<1x256xi1>
    %77 = vector.extract_strided_slice %1 {offsets = [0, 241], sizes = [4, 15], strides = [1, 1]} : vector<4x256xf32> to vector<4x15xf32>
    %78 = vector.extract_strided_slice %1 {offsets = [0, 0], sizes = [4, 241], strides = [1, 1]} : vector<4x256xf32> to vector<4x241xf32>
    %79 = tpu.concatenate %77, %78 in 1 : vector<4x15xf32>, vector<4x241xf32> -> vector<4x256xf32>
    %cst_27 = arith.constant 0.000000e+00 : f32
    %80 = vector.shape_cast %76 : vector<1x256xi1> to vector<1x256xi1>
    %81 = vector.broadcast %80 : vector<1x256xi1> to vector<4x256xi1>
    %82 = vector.broadcast %cst_27 : f32 to vector<4x256xf32>
    %83 = arith.select %81, %79, %82 : vector<4x256xi1>, vector<4x256xf32>
    %c0_i32_28 = arith.constant 0 : i32
    %84 = vector.broadcast %c0_i32_28 : i32 to vector<1x256xi32>
    %85 = arith.addi %2, %84 : vector<1x256xi32>
    %c0_i32_29 = arith.constant 0 : i32
    %86 = vector.broadcast %c0_i32_29 : i32 to vector<1x256xi32>
    %87 = arith.cmpi sge, %85, %86 : vector<1x256xi32>
    %c0_i32_30 = arith.constant 0 : i32
    %88 = vector.broadcast %c0_i32_30 : i32 to vector<1x256xi32>
    %89 = arith.addi %2, %88 : vector<1x256xi32>
    %c16_i32_31 = arith.constant 16 : i32
    %90 = vector.broadcast %c16_i32_31 : i32 to vector<1x256xi32>
    %91 = arith.cmpi slt, %89, %90 : vector<1x256xi32>
    %92 = arith.andi %87, %91 : vector<1x256xi1>
    %c-1_i32_32 = arith.constant -1 : i32
    %93 = vector.broadcast %c-1_i32_32 : i32 to vector<1x256xi32>
    %94 = arith.addi %3, %93 : vector<1x256xi32>
    %c0_i32_33 = arith.constant 0 : i32
    %95 = vector.broadcast %c0_i32_33 : i32 to vector<1x256xi32>
    %96 = arith.cmpi sge, %94, %95 : vector<1x256xi32>
    %97 = arith.andi %92, %96 : vector<1x256xi1>
    %c-1_i32_34 = arith.constant -1 : i32
    %98 = vector.broadcast %c-1_i32_34 : i32 to vector<1x256xi32>
    %99 = arith.addi %3, %98 : vector<1x256xi32>
    %c16_i32_35 = arith.constant 16 : i32
    %100 = vector.broadcast %c16_i32_35 : i32 to vector<1x256xi32>
    %101 = arith.cmpi slt, %99, %100 : vector<1x256xi32>
    %102 = arith.andi %97, %101 : vector<1x256xi1>
    %103 = vector.extract_strided_slice %1 {offsets = [0, 255], sizes = [4, 1], strides = [1, 1]} : vector<4x256xf32> to vector<4x1xf32>
    %104 = vector.extract_strided_slice %1 {offsets = [0, 0], sizes = [4, 255], strides = [1, 1]} : vector<4x256xf32> to vector<4x255xf32>
    %105 = tpu.concatenate %103, %104 in 1 : vector<4x1xf32>, vector<4x255xf32> -> vector<4x256xf32>
    %cst_36 = arith.constant 0.000000e+00 : f32
    %106 = vector.shape_cast %102 : vector<1x256xi1> to vector<1x256xi1>
    %107 = vector.broadcast %106 : vector<1x256xi1> to vector<4x256xi1>
    %108 = vector.broadcast %cst_36 : f32 to vector<4x256xf32>
    %109 = arith.select %107, %105, %108 : vector<4x256xi1>, vector<4x256xf32>
    %c0_i32_37 = arith.constant 0 : i32
    %110 = vector.broadcast %c0_i32_37 : i32 to vector<1x256xi32>
    %111 = arith.addi %2, %110 : vector<1x256xi32>
    %c0_i32_38 = arith.constant 0 : i32
    %112 = vector.broadcast %c0_i32_38 : i32 to vector<1x256xi32>
    %113 = arith.cmpi sge, %111, %112 : vector<1x256xi32>
    %c0_i32_39 = arith.constant 0 : i32
    %114 = vector.broadcast %c0_i32_39 : i32 to vector<1x256xi32>
    %115 = arith.addi %2, %114 : vector<1x256xi32>
    %c16_i32_40 = arith.constant 16 : i32
    %116 = vector.broadcast %c16_i32_40 : i32 to vector<1x256xi32>
    %117 = arith.cmpi slt, %115, %116 : vector<1x256xi32>
    %118 = arith.andi %113, %117 : vector<1x256xi1>
    %c0_i32_41 = arith.constant 0 : i32
    %119 = vector.broadcast %c0_i32_41 : i32 to vector<1x256xi32>
    %120 = arith.addi %3, %119 : vector<1x256xi32>
    %c0_i32_42 = arith.constant 0 : i32
    %121 = vector.broadcast %c0_i32_42 : i32 to vector<1x256xi32>
    %122 = arith.cmpi sge, %120, %121 : vector<1x256xi32>
    %123 = arith.andi %118, %122 : vector<1x256xi1>
    %c0_i32_43 = arith.constant 0 : i32
    %124 = vector.broadcast %c0_i32_43 : i32 to vector<1x256xi32>
    %125 = arith.addi %3, %124 : vector<1x256xi32>
    %c16_i32_44 = arith.constant 16 : i32
    %126 = vector.broadcast %c16_i32_44 : i32 to vector<1x256xi32>
    %127 = arith.cmpi slt, %125, %126 : vector<1x256xi32>
    %128 = arith.andi %123, %127 : vector<1x256xi1>
    %cst_45 = arith.constant 0.000000e+00 : f32
    %129 = vector.shape_cast %128 : vector<1x256xi1> to vector<1x256xi1>
    %130 = vector.broadcast %129 : vector<1x256xi1> to vector<4x256xi1>
    %131 = vector.broadcast %cst_45 : f32 to vector<4x256xf32>
    %132 = arith.select %130, %1, %131 : vector<4x256xi1>, vector<4x256xf32>
    %c0_i32_46 = arith.constant 0 : i32
    %133 = vector.broadcast %c0_i32_46 : i32 to vector<1x256xi32>
    %134 = arith.addi %2, %133 : vector<1x256xi32>
    %c0_i32_47 = arith.constant 0 : i32
    %135 = vector.broadcast %c0_i32_47 : i32 to vector<1x256xi32>
    %136 = arith.cmpi sge, %134, %135 : vector<1x256xi32>
    %c0_i32_48 = arith.constant 0 : i32
    %137 = vector.broadcast %c0_i32_48 : i32 to vector<1x256xi32>
    %138 = arith.addi %2, %137 : vector<1x256xi32>
    %c16_i32_49 = arith.constant 16 : i32
    %139 = vector.broadcast %c16_i32_49 : i32 to vector<1x256xi32>
    %140 = arith.cmpi slt, %138, %139 : vector<1x256xi32>
    %141 = arith.andi %136, %140 : vector<1x256xi1>
    %c1_i32_50 = arith.constant 1 : i32
    %142 = vector.broadcast %c1_i32_50 : i32 to vector<1x256xi32>
    %143 = arith.addi %3, %142 : vector<1x256xi32>
    %c0_i32_51 = arith.constant 0 : i32
    %144 = vector.broadcast %c0_i32_51 : i32 to vector<1x256xi32>
    %145 = arith.cmpi sge, %143, %144 : vector<1x256xi32>
    %146 = arith.andi %141, %145 : vector<1x256xi1>
    %c1_i32_52 = arith.constant 1 : i32
    %147 = vector.broadcast %c1_i32_52 : i32 to vector<1x256xi32>
    %148 = arith.addi %3, %147 : vector<1x256xi32>
    %c16_i32_53 = arith.constant 16 : i32
    %149 = vector.broadcast %c16_i32_53 : i32 to vector<1x256xi32>
    %150 = arith.cmpi slt, %148, %149 : vector<1x256xi32>
    %151 = arith.andi %146, %150 : vector<1x256xi1>
    %152 = vector.extract_strided_slice %1 {offsets = [0, 1], sizes = [4, 255], strides = [1, 1]} : vector<4x256xf32> to vector<4x255xf32>
    %153 = vector.extract_strided_slice %1 {offsets = [0, 0], sizes = [4, 1], strides = [1, 1]} : vector<4x256xf32> to vector<4x1xf32>
    %154 = tpu.concatenate %152, %153 in 1 : vector<4x255xf32>, vector<4x1xf32> -> vector<4x256xf32>
    %cst_54 = arith.constant 0.000000e+00 : f32
    %155 = vector.shape_cast %151 : vector<1x256xi1> to vector<1x256xi1>
    %156 = vector.broadcast %155 : vector<1x256xi1> to vector<4x256xi1>
    %157 = vector.broadcast %cst_54 : f32 to vector<4x256xf32>
    %158 = arith.select %156, %154, %157 : vector<4x256xi1>, vector<4x256xf32>
    %c1_i32_55 = arith.constant 1 : i32
    %159 = vector.broadcast %c1_i32_55 : i32 to vector<1x256xi32>
    %160 = arith.addi %2, %159 : vector<1x256xi32>
    %c0_i32_56 = arith.constant 0 : i32
    %161 = vector.broadcast %c0_i32_56 : i32 to vector<1x256xi32>
    %162 = arith.cmpi sge, %160, %161 : vector<1x256xi32>
    %c1_i32_57 = arith.constant 1 : i32
    %163 = vector.broadcast %c1_i32_57 : i32 to vector<1x256xi32>
    %164 = arith.addi %2, %163 : vector<1x256xi32>
    %c16_i32_58 = arith.constant 16 : i32
    %165 = vector.broadcast %c16_i32_58 : i32 to vector<1x256xi32>
    %166 = arith.cmpi slt, %164, %165 : vector<1x256xi32>
    %167 = arith.andi %162, %166 : vector<1x256xi1>
    %c-1_i32_59 = arith.constant -1 : i32
    %168 = vector.broadcast %c-1_i32_59 : i32 to vector<1x256xi32>
    %169 = arith.addi %3, %168 : vector<1x256xi32>
    %c0_i32_60 = arith.constant 0 : i32
    %170 = vector.broadcast %c0_i32_60 : i32 to vector<1x256xi32>
    %171 = arith.cmpi sge, %169, %170 : vector<1x256xi32>
    %172 = arith.andi %167, %171 : vector<1x256xi1>
    %c-1_i32_61 = arith.constant -1 : i32
    %173 = vector.broadcast %c-1_i32_61 : i32 to vector<1x256xi32>
    %174 = arith.addi %3, %173 : vector<1x256xi32>
    %c16_i32_62 = arith.constant 16 : i32
    %175 = vector.broadcast %c16_i32_62 : i32 to vector<1x256xi32>
    %176 = arith.cmpi slt, %174, %175 : vector<1x256xi32>
    %177 = arith.andi %172, %176 : vector<1x256xi1>
    %178 = vector.extract_strided_slice %1 {offsets = [0, 15], sizes = [4, 241], strides = [1, 1]} : vector<4x256xf32> to vector<4x241xf32>
    %179 = vector.extract_strided_slice %1 {offsets = [0, 0], sizes = [4, 15], strides = [1, 1]} : vector<4x256xf32> to vector<4x15xf32>
    %180 = tpu.concatenate %178, %179 in 1 : vector<4x241xf32>, vector<4x15xf32> -> vector<4x256xf32>
    %cst_63 = arith.constant 0.000000e+00 : f32
    %181 = vector.shape_cast %177 : vector<1x256xi1> to vector<1x256xi1>
    %182 = vector.broadcast %181 : vector<1x256xi1> to vector<4x256xi1>
    %183 = vector.broadcast %cst_63 : f32 to vector<4x256xf32>
    %184 = arith.select %182, %180, %183 : vector<4x256xi1>, vector<4x256xf32>
    %c1_i32_64 = arith.constant 1 : i32
    %185 = vector.broadcast %c1_i32_64 : i32 to vector<1x256xi32>
    %186 = arith.addi %2, %185 : vector<1x256xi32>
    %c0_i32_65 = arith.constant 0 : i32
    %187 = vector.broadcast %c0_i32_65 : i32 to vector<1x256xi32>
    %188 = arith.cmpi sge, %186, %187 : vector<1x256xi32>
    %c1_i32_66 = arith.constant 1 : i32
    %189 = vector.broadcast %c1_i32_66 : i32 to vector<1x256xi32>
    %190 = arith.addi %2, %189 : vector<1x256xi32>
    %c16_i32_67 = arith.constant 16 : i32
    %191 = vector.broadcast %c16_i32_67 : i32 to vector<1x256xi32>
    %192 = arith.cmpi slt, %190, %191 : vector<1x256xi32>
    %193 = arith.andi %188, %192 : vector<1x256xi1>
    %c0_i32_68 = arith.constant 0 : i32
    %194 = vector.broadcast %c0_i32_68 : i32 to vector<1x256xi32>
    %195 = arith.addi %3, %194 : vector<1x256xi32>
    %c0_i32_69 = arith.constant 0 : i32
    %196 = vector.broadcast %c0_i32_69 : i32 to vector<1x256xi32>
    %197 = arith.cmpi sge, %195, %196 : vector<1x256xi32>
    %198 = arith.andi %193, %197 : vector<1x256xi1>
    %c0_i32_70 = arith.constant 0 : i32
    %199 = vector.broadcast %c0_i32_70 : i32 to vector<1x256xi32>
    %200 = arith.addi %3, %199 : vector<1x256xi32>
    %c16_i32_71 = arith.constant 16 : i32
    %201 = vector.broadcast %c16_i32_71 : i32 to vector<1x256xi32>
    %202 = arith.cmpi slt, %200, %201 : vector<1x256xi32>
    %203 = arith.andi %198, %202 : vector<1x256xi1>
    %204 = vector.extract_strided_slice %1 {offsets = [0, 16], sizes = [4, 240], strides = [1, 1]} : vector<4x256xf32> to vector<4x240xf32>
    %205 = vector.extract_strided_slice %1 {offsets = [0, 0], sizes = [4, 16], strides = [1, 1]} : vector<4x256xf32> to vector<4x16xf32>
    %206 = tpu.concatenate %204, %205 in 1 : vector<4x240xf32>, vector<4x16xf32> -> vector<4x256xf32>
    %cst_72 = arith.constant 0.000000e+00 : f32
    %207 = vector.shape_cast %203 : vector<1x256xi1> to vector<1x256xi1>
    %208 = vector.broadcast %207 : vector<1x256xi1> to vector<4x256xi1>
    %209 = vector.broadcast %cst_72 : f32 to vector<4x256xf32>
    %210 = arith.select %208, %206, %209 : vector<4x256xi1>, vector<4x256xf32>
    %c1_i32_73 = arith.constant 1 : i32
    %211 = vector.broadcast %c1_i32_73 : i32 to vector<1x256xi32>
    %212 = arith.addi %2, %211 : vector<1x256xi32>
    %c0_i32_74 = arith.constant 0 : i32
    %213 = vector.broadcast %c0_i32_74 : i32 to vector<1x256xi32>
    %214 = arith.cmpi sge, %212, %213 : vector<1x256xi32>
    %c1_i32_75 = arith.constant 1 : i32
    %215 = vector.broadcast %c1_i32_75 : i32 to vector<1x256xi32>
    %216 = arith.addi %2, %215 : vector<1x256xi32>
    %c16_i32_76 = arith.constant 16 : i32
    %217 = vector.broadcast %c16_i32_76 : i32 to vector<1x256xi32>
    %218 = arith.cmpi slt, %216, %217 : vector<1x256xi32>
    %219 = arith.andi %214, %218 : vector<1x256xi1>
    %c1_i32_77 = arith.constant 1 : i32
    %220 = vector.broadcast %c1_i32_77 : i32 to vector<1x256xi32>
    %221 = arith.addi %3, %220 : vector<1x256xi32>
    %c0_i32_78 = arith.constant 0 : i32
    %222 = vector.broadcast %c0_i32_78 : i32 to vector<1x256xi32>
    %223 = arith.cmpi sge, %221, %222 : vector<1x256xi32>
    %224 = arith.andi %219, %223 : vector<1x256xi1>
    %c1_i32_79 = arith.constant 1 : i32
    %225 = vector.broadcast %c1_i32_79 : i32 to vector<1x256xi32>
    %226 = arith.addi %3, %225 : vector<1x256xi32>
    %c16_i32_80 = arith.constant 16 : i32
    %227 = vector.broadcast %c16_i32_80 : i32 to vector<1x256xi32>
    %228 = arith.cmpi slt, %226, %227 : vector<1x256xi32>
    %229 = arith.andi %224, %228 : vector<1x256xi1>
    %230 = vector.extract_strided_slice %1 {offsets = [0, 17], sizes = [4, 239], strides = [1, 1]} : vector<4x256xf32> to vector<4x239xf32>
    %231 = vector.extract_strided_slice %1 {offsets = [0, 0], sizes = [4, 17], strides = [1, 1]} : vector<4x256xf32> to vector<4x17xf32>
    %232 = tpu.concatenate %230, %231 in 1 : vector<4x239xf32>, vector<4x17xf32> -> vector<4x256xf32>
    %cst_81 = arith.constant 0.000000e+00 : f32
    %233 = vector.shape_cast %229 : vector<1x256xi1> to vector<1x256xi1>
    %234 = vector.broadcast %233 : vector<1x256xi1> to vector<4x256xi1>
    %235 = vector.broadcast %cst_81 : f32 to vector<4x256xf32>
    %236 = arith.select %234, %232, %235 : vector<4x256xi1>, vector<4x256xf32>
    %237 = tpu.concatenate %31, %57, %83, %109, %132, %158, %184, %210, %236 in 0 : vector<4x256xf32>, vector<4x256xf32>, vector<4x256xf32>, vector<4x256xf32>, vector<4x256xf32>, vector<4x256xf32>, vector<4x256xf32>, vector<4x256xf32>, vector<4x256xf32> -> vector<36x256xf32>
    %c0_82 = arith.constant 0 : index
    %c0_83 = arith.constant 0 : index
    %238 = vector.load %arg4[%c0_82, %c0_83] : memref<18x36xf32, #tpu.memory_space<vmem>>, vector<18x36xf32>
    %cst_84 = arith.constant dense<0.000000e+00> : vector<18x256xf32>
    %239 = tpu.matmul %238, %237, %cst_84 {dimension_numbers = #tpu.dot_dimension_numbers<[1], [0], [0], [1], [0, 0, 1, 1], [], []>} : vector<18x36xf32>, vector<36x256xf32>, vector<18x256xf32> -> vector<18x256xf32>
    %c0_85 = arith.constant 0 : index
    %c0_86 = arith.constant 0 : index
    %240 = vector.load %arg5[%c0_85, %c0_86] : memref<18x1xf32, #tpu.memory_space<vmem>>, vector<18x1xf32>
    %241 = vector.broadcast %240 : vector<18x1xf32> to vector<18x256xf32>
    %242 = arith.addf %239, %241 : vector<18x256xf32>
    %c0_87 = arith.constant 0 : index
    %c0_88 = arith.constant 0 : index
    %243 = vector.load %arg6[%c0_87, %c0_88] : memref<36x4xf32, #tpu.memory_space<vmem>>, vector<36x4xf32>
    %cst_89 = arith.constant dense<0.000000e+00> : vector<36x256xf32>
    %244 = tpu.matmul %243, %1, %cst_89 {dimension_numbers = #tpu.dot_dimension_numbers<[1], [0], [0], [1], [0, 0, 1, 1], [], []>} : vector<36x4xf32>, vector<4x256xf32>, vector<36x256xf32> -> vector<36x256xf32>
    %245 = vector.extract_strided_slice %242 {offsets = [0, 0], sizes = [1, 256], strides = [1, 1]} : vector<18x256xf32> to vector<1x256xf32>
    %cst_90 = arith.constant -1.000000e+00 : f32
    %246 = vector.broadcast %cst_90 : f32 to vector<1x256xf32>
    %247 = arith.addf %245, %246 : vector<1x256xf32>
    %c0_91 = arith.constant 0 : index
    %c0_92 = arith.constant 0 : index
    %c0_93 = arith.constant 0 : index
    %248 = vector.load %arg10[%c0_91, %c0_92, %c0_93] : memref<9x1x256xf32, #tpu.memory_space<vmem>>, vector<1x1x256xf32>
    %249 = vector.shape_cast %248 : vector<1x1x256xf32> to vector<1x256xf32>
    %250 = vector.shape_cast %247 : vector<1x256xf32> to vector<1x1x256xf32>
    tpu.vector_store %arg10[%c0_91, %c0_92, %c0_93], %250 {strides = array<i32>} : memref<9x1x256xf32, #tpu.memory_space<vmem>>, vector<1x1x256xf32>,
    %251 = vector.extract_strided_slice %242 {offsets = [1, 0], sizes = [1, 256], strides = [1, 1]} : vector<18x256xf32> to vector<1x256xf32>
    %cst_94 = arith.constant -1.000000e+00 : f32
    %252 = vector.broadcast %cst_94 : f32 to vector<1x256xf32>
    %253 = arith.addf %251, %252 : vector<1x256xf32>
    %c0_95 = arith.constant 0 : index
    %c0_96 = arith.constant 0 : index
    %c0_97 = arith.constant 0 : index
    %254 = vector.load %arg11[%c0_95, %c0_96, %c0_97] : memref<9x1x256xf32, #tpu.memory_space<vmem>>, vector<1x1x256xf32>
    %255 = vector.shape_cast %254 : vector<1x1x256xf32> to vector<1x256xf32>
    %256 = vector.shape_cast %253 : vector<1x256xf32> to vector<1x1x256xf32>
    tpu.vector_store %arg11[%c0_95, %c0_96, %c0_97], %256 {strides = array<i32>} : memref<9x1x256xf32, #tpu.memory_space<vmem>>, vector<1x1x256xf32>,
    %257 = vector.extract_strided_slice %244 {offsets = [0, 0], sizes = [4, 256], strides = [1, 1]} : vector<36x256xf32> to vector<4x256xf32>
    %c0_98 = arith.constant 0 : index
    %c0_99 = arith.constant 0 : index
    %c0_100 = arith.constant 0 : index
    %258 = vector.load %arg12[%c0_98, %c0_99, %c0_100] : memref<9x4x256xf32, #tpu.memory_space<vmem>>, vector<1x4x256xf32>
    %259 = vector.shape_cast %258 : vector<1x4x256xf32> to vector<4x256xf32>
    %260 = vector.shape_cast %257 : vector<4x256xf32> to vector<1x4x256xf32>
    tpu.vector_store %arg12[%c0_98, %c0_99, %c0_100], %260 {strides = array<i32>} : memref<9x4x256xf32, #tpu.memory_space<vmem>>, vector<1x4x256xf32>,
    %261 = vector.extract_strided_slice %242 {offsets = [2, 0], sizes = [1, 256], strides = [1, 1]} : vector<18x256xf32> to vector<1x256xf32>
    %cst_101 = arith.constant -1.000000e+00 : f32
    %262 = vector.broadcast %cst_101 : f32 to vector<1x256xf32>
    %263 = arith.addf %261, %262 : vector<1x256xf32>
    %c1 = arith.constant 1 : index
    %c0_102 = arith.constant 0 : index
    %c0_103 = arith.constant 0 : index
    %264 = vector.load %arg10[%c1, %c0_102, %c0_103] : memref<9x1x256xf32, #tpu.memory_space<vmem>>, vector<1x1x256xf32>
    %265 = vector.shape_cast %264 : vector<1x1x256xf32> to vector<1x256xf32>
    %266 = vector.shape_cast %263 : vector<1x256xf32> to vector<1x1x256xf32>
    tpu.vector_store %arg10[%c1, %c0_102, %c0_103], %266 {strides = array<i32>} : memref<9x1x256xf32, #tpu.memory_space<vmem>>, vector<1x1x256xf32>,
    %267 = vector.extract_strided_slice %242 {offsets = [3, 0], sizes = [1, 256], strides = [1, 1]} : vector<18x256xf32> to vector<1x256xf32>
    %cst_104 = arith.constant 0.000000e+00 : f32
    %268 = vector.broadcast %cst_104 : f32 to vector<1x256xf32>
    %269 = arith.addf %267, %268 : vector<1x256xf32>
    %c1_105 = arith.constant 1 : index
    %c0_106 = arith.constant 0 : index
    %c0_107 = arith.constant 0 : index
    %270 = vector.load %arg11[%c1_105, %c0_106, %c0_107] : memref<9x1x256xf32, #tpu.memory_space<vmem>>, vector<1x1x256xf32>
    %271 = vector.shape_cast %270 : vector<1x1x256xf32> to vector<1x256xf32>
    %272 = vector.shape_cast %269 : vector<1x256xf32> to vector<1x1x256xf32>
    tpu.vector_store %arg11[%c1_105, %c0_106, %c0_107], %272 {strides = array<i32>} : memref<9x1x256xf32, #tpu.memory_space<vmem>>, vector<1x1x256xf32>,
    %273 = vector.extract_strided_slice %244 {offsets = [4, 0], sizes = [4, 256], strides = [1, 1]} : vector<36x256xf32> to vector<4x256xf32>
    %c1_108 = arith.constant 1 : index
    %c0_109 = arith.constant 0 : index
    %c0_110 = arith.constant 0 : index
    %274 = vector.load %arg12[%c1_108, %c0_109, %c0_110] : memref<9x4x256xf32, #tpu.memory_space<vmem>>, vector<1x4x256xf32>
    %275 = vector.shape_cast %274 : vector<1x4x256xf32> to vector<4x256xf32>
    %276 = vector.shape_cast %273 : vector<4x256xf32> to vector<1x4x256xf32>
    tpu.vector_store %arg12[%c1_108, %c0_109, %c0_110], %276 {strides = array<i32>} : memref<9x4x256xf32, #tpu.memory_space<vmem>>, vector<1x4x256xf32>,
    %277 = vector.extract_strided_slice %242 {offsets = [4, 0], sizes = [1, 256], strides = [1, 1]} : vector<18x256xf32> to vector<1x256xf32>
    %cst_111 = arith.constant -1.000000e+00 : f32
    %278 = vector.broadcast %cst_111 : f32 to vector<1x256xf32>
    %279 = arith.addf %277, %278 : vector<1x256xf32>
    %c2 = arith.constant 2 : index
    %c0_112 = arith.constant 0 : index
    %c0_113 = arith.constant 0 : index
    %280 = vector.load %arg10[%c2, %c0_112, %c0_113] : memref<9x1x256xf32, #tpu.memory_space<vmem>>, vector<1x1x256xf32>
    %281 = vector.shape_cast %280 : vector<1x1x256xf32> to vector<1x256xf32>
    %282 = vector.shape_cast %279 : vector<1x256xf32> to vector<1x1x256xf32>
    tpu.vector_store %arg10[%c2, %c0_112, %c0_113], %282 {strides = array<i32>} : memref<9x1x256xf32, #tpu.memory_space<vmem>>, vector<1x1x256xf32>,
    %283 = vector.extract_strided_slice %242 {offsets = [5, 0], sizes = [1, 256], strides = [1, 1]} : vector<18x256xf32> to vector<1x256xf32>
    %cst_114 = arith.constant 1.000000e+00 : f32
    %284 = vector.broadcast %cst_114 : f32 to vector<1x256xf32>
    %285 = arith.addf %283, %284 : vector<1x256xf32>
    %c2_115 = arith.constant 2 : index
    %c0_116 = arith.constant 0 : index
    %c0_117 = arith.constant 0 : index
    %286 = vector.load %arg11[%c2_115, %c0_116, %c0_117] : memref<9x1x256xf32, #tpu.memory_space<vmem>>, vector<1x1x256xf32>
    %287 = vector.shape_cast %286 : vector<1x1x256xf32> to vector<1x256xf32>
    %288 = vector.shape_cast %285 : vector<1x256xf32> to vector<1x1x256xf32>
    tpu.vector_store %arg11[%c2_115, %c0_116, %c0_117], %288 {strides = array<i32>} : memref<9x1x256xf32, #tpu.memory_space<vmem>>, vector<1x1x256xf32>,
    %289 = vector.extract_strided_slice %244 {offsets = [8, 0], sizes = [4, 256], strides = [1, 1]} : vector<36x256xf32> to vector<4x256xf32>
    %c2_118 = arith.constant 2 : index
    %c0_119 = arith.constant 0 : index
    %c0_120 = arith.constant 0 : index
    %290 = vector.load %arg12[%c2_118, %c0_119, %c0_120] : memref<9x4x256xf32, #tpu.memory_space<vmem>>, vector<1x4x256xf32>
    %291 = vector.shape_cast %290 : vector<1x4x256xf32> to vector<4x256xf32>
    %292 = vector.shape_cast %289 : vector<4x256xf32> to vector<1x4x256xf32>
    tpu.vector_store %arg12[%c2_118, %c0_119, %c0_120], %292 {strides = array<i32>} : memref<9x4x256xf32, #tpu.memory_space<vmem>>, vector<1x4x256xf32>,
    %293 = vector.extract_strided_slice %242 {offsets = [6, 0], sizes = [1, 256], strides = [1, 1]} : vector<18x256xf32> to vector<1x256xf32>
    %cst_121 = arith.constant 0.000000e+00 : f32
    %294 = vector.broadcast %cst_121 : f32 to vector<1x256xf32>
    %295 = arith.addf %293, %294 : vector<1x256xf32>
    %c3 = arith.constant 3 : index
    %c0_122 = arith.constant 0 : index
    %c0_123 = arith.constant 0 : index
    %296 = vector.load %arg10[%c3, %c0_122, %c0_123] : memref<9x1x256xf32, #tpu.memory_space<vmem>>, vector<1x1x256xf32>
    %297 = vector.shape_cast %296 : vector<1x1x256xf32> to vector<1x256xf32>
    %298 = vector.shape_cast %295 : vector<1x256xf32> to vector<1x1x256xf32>
    tpu.vector_store %arg10[%c3, %c0_122, %c0_123], %298 {strides = array<i32>} : memref<9x1x256xf32, #tpu.memory_space<vmem>>, vector<1x1x256xf32>,
    %299 = vector.extract_strided_slice %242 {offsets = [7, 0], sizes = [1, 256], strides = [1, 1]} : vector<18x256xf32> to vector<1x256xf32>
    %cst_124 = arith.constant -1.000000e+00 : f32
    %300 = vector.broadcast %cst_124 : f32 to vector<1x256xf32>
    %301 = arith.addf %299, %300 : vector<1x256xf32>
    %c3_125 = arith.constant 3 : index
    %c0_126 = arith.constant 0 : index
    %c0_127 = arith.constant 0 : index
    %302 = vector.load %arg11[%c3_125, %c0_126, %c0_127] : memref<9x1x256xf32, #tpu.memory_space<vmem>>, vector<1x1x256xf32>
    %303 = vector.shape_cast %302 : vector<1x1x256xf32> to vector<1x256xf32>
    %304 = vector.shape_cast %301 : vector<1x256xf32> to vector<1x1x256xf32>
    tpu.vector_store %arg11[%c3_125, %c0_126, %c0_127], %304 {strides = array<i32>} : memref<9x1x256xf32, #tpu.memory_space<vmem>>, vector<1x1x256xf32>,
    %305 = vector.extract_strided_slice %244 {offsets = [12, 0], sizes = [4, 256], strides = [1, 1]} : vector<36x256xf32> to vector<4x256xf32>
    %c3_128 = arith.constant 3 : index
    %c0_129 = arith.constant 0 : index
    %c0_130 = arith.constant 0 : index
    %306 = vector.load %arg12[%c3_128, %c0_129, %c0_130] : memref<9x4x256xf32, #tpu.memory_space<vmem>>, vector<1x4x256xf32>
    %307 = vector.shape_cast %306 : vector<1x4x256xf32> to vector<4x256xf32>
    %308 = vector.shape_cast %305 : vector<4x256xf32> to vector<1x4x256xf32>
    tpu.vector_store %arg12[%c3_128, %c0_129, %c0_130], %308 {strides = array<i32>} : memref<9x4x256xf32, #tpu.memory_space<vmem>>, vector<1x4x256xf32>,
    %309 = vector.extract_strided_slice %242 {offsets = [8, 0], sizes = [1, 256], strides = [1, 1]} : vector<18x256xf32> to vector<1x256xf32>
    %cst_131 = arith.constant 0.000000e+00 : f32
    %310 = vector.broadcast %cst_131 : f32 to vector<1x256xf32>
    %311 = arith.addf %309, %310 : vector<1x256xf32>
    %c4 = arith.constant 4 : index
    %c0_132 = arith.constant 0 : index
    %c0_133 = arith.constant 0 : index
    %312 = vector.load %arg10[%c4, %c0_132, %c0_133] : memref<9x1x256xf32, #tpu.memory_space<vmem>>, vector<1x1x256xf32>
    %313 = vector.shape_cast %312 : vector<1x1x256xf32> to vector<1x256xf32>
    %314 = vector.shape_cast %311 : vector<1x256xf32> to vector<1x1x256xf32>
    tpu.vector_store %arg10[%c4, %c0_132, %c0_133], %314 {strides = array<i32>} : memref<9x1x256xf32, #tpu.memory_space<vmem>>, vector<1x1x256xf32>,
    %315 = vector.extract_strided_slice %242 {offsets = [9, 0], sizes = [1, 256], strides = [1, 1]} : vector<18x256xf32> to vector<1x256xf32>
    %cst_134 = arith.constant 0.000000e+00 : f32
    %316 = vector.broadcast %cst_134 : f32 to vector<1x256xf32>
    %317 = arith.addf %315, %316 : vector<1x256xf32>
    %c4_135 = arith.constant 4 : index
    %c0_136 = arith.constant 0 : index
    %c0_137 = arith.constant 0 : index
    %318 = vector.load %arg11[%c4_135, %c0_136, %c0_137] : memref<9x1x256xf32, #tpu.memory_space<vmem>>, vector<1x1x256xf32>
    %319 = vector.shape_cast %318 : vector<1x1x256xf32> to vector<1x256xf32>
    %320 = vector.shape_cast %317 : vector<1x256xf32> to vector<1x1x256xf32>
    tpu.vector_store %arg11[%c4_135, %c0_136, %c0_137], %320 {strides = array<i32>} : memref<9x1x256xf32, #tpu.memory_space<vmem>>, vector<1x1x256xf32>,
    %321 = vector.extract_strided_slice %244 {offsets = [16, 0], sizes = [4, 256], strides = [1, 1]} : vector<36x256xf32> to vector<4x256xf32>
    %c4_138 = arith.constant 4 : index
    %c0_139 = arith.constant 0 : index
    %c0_140 = arith.constant 0 : index
    %322 = vector.load %arg12[%c4_138, %c0_139, %c0_140] : memref<9x4x256xf32, #tpu.memory_space<vmem>>, vector<1x4x256xf32>
    %323 = vector.shape_cast %322 : vector<1x4x256xf32> to vector<4x256xf32>
    %324 = vector.shape_cast %321 : vector<4x256xf32> to vector<1x4x256xf32>
    tpu.vector_store %arg12[%c4_138, %c0_139, %c0_140], %324 {strides = array<i32>} : memref<9x4x256xf32, #tpu.memory_space<vmem>>, vector<1x4x256xf32>,
    %325 = vector.extract_strided_slice %242 {offsets = [10, 0], sizes = [1, 256], strides = [1, 1]} : vector<18x256xf32> to vector<1x256xf32>
    %cst_141 = arith.constant 0.000000e+00 : f32
    %326 = vector.broadcast %cst_141 : f32 to vector<1x256xf32>
    %327 = arith.addf %325, %326 : vector<1x256xf32>
    %c5 = arith.constant 5 : index
    %c0_142 = arith.constant 0 : index
    %c0_143 = arith.constant 0 : index
    %328 = vector.load %arg10[%c5, %c0_142, %c0_143] : memref<9x1x256xf32, #tpu.memory_space<vmem>>, vector<1x1x256xf32>
    %329 = vector.shape_cast %328 : vector<1x1x256xf32> to vector<1x256xf32>
    %330 = vector.shape_cast %327 : vector<1x256xf32> to vector<1x1x256xf32>
    tpu.vector_store %arg10[%c5, %c0_142, %c0_143], %330 {strides = array<i32>} : memref<9x1x256xf32, #tpu.memory_space<vmem>>, vector<1x1x256xf32>,
    %331 = vector.extract_strided_slice %242 {offsets = [11, 0], sizes = [1, 256], strides = [1, 1]} : vector<18x256xf32> to vector<1x256xf32>
    %cst_144 = arith.constant 1.000000e+00 : f32
    %332 = vector.broadcast %cst_144 : f32 to vector<1x256xf32>
    %333 = arith.addf %331, %332 : vector<1x256xf32>
    %c5_145 = arith.constant 5 : index
    %c0_146 = arith.constant 0 : index
    %c0_147 = arith.constant 0 : index
    %334 = vector.load %arg11[%c5_145, %c0_146, %c0_147] : memref<9x1x256xf32, #tpu.memory_space<vmem>>, vector<1x1x256xf32>
    %335 = vector.shape_cast %334 : vector<1x1x256xf32> to vector<1x256xf32>
    %336 = vector.shape_cast %333 : vector<1x256xf32> to vector<1x1x256xf32>
    tpu.vector_store %arg11[%c5_145, %c0_146, %c0_147], %336 {strides = array<i32>} : memref<9x1x256xf32, #tpu.memory_space<vmem>>, vector<1x1x256xf32>,
    %337 = vector.extract_strided_slice %244 {offsets = [20, 0], sizes = [4, 256], strides = [1, 1]} : vector<36x256xf32> to vector<4x256xf32>
    %c5_148 = arith.constant 5 : index
    %c0_149 = arith.constant 0 : index
    %c0_150 = arith.constant 0 : index
    %338 = vector.load %arg12[%c5_148, %c0_149, %c0_150] : memref<9x4x256xf32, #tpu.memory_space<vmem>>, vector<1x4x256xf32>
    %339 = vector.shape_cast %338 : vector<1x4x256xf32> to vector<4x256xf32>
    %340 = vector.shape_cast %337 : vector<4x256xf32> to vector<1x4x256xf32>
    tpu.vector_store %arg12[%c5_148, %c0_149, %c0_150], %340 {strides = array<i32>} : memref<9x4x256xf32, #tpu.memory_space<vmem>>, vector<1x4x256xf32>,
    %341 = vector.extract_strided_slice %242 {offsets = [12, 0], sizes = [1, 256], strides = [1, 1]} : vector<18x256xf32> to vector<1x256xf32>
    %cst_151 = arith.constant 1.000000e+00 : f32
    %342 = vector.broadcast %cst_151 : f32 to vector<1x256xf32>
    %343 = arith.addf %341, %342 : vector<1x256xf32>
    %c6 = arith.constant 6 : index
    %c0_152 = arith.constant 0 : index
    %c0_153 = arith.constant 0 : index
    %344 = vector.load %arg10[%c6, %c0_152, %c0_153] : memref<9x1x256xf32, #tpu.memory_space<vmem>>, vector<1x1x256xf32>
    %345 = vector.shape_cast %344 : vector<1x1x256xf32> to vector<1x256xf32>
    %346 = vector.shape_cast %343 : vector<1x256xf32> to vector<1x1x256xf32>
    tpu.vector_store %arg10[%c6, %c0_152, %c0_153], %346 {strides = array<i32>} : memref<9x1x256xf32, #tpu.memory_space<vmem>>, vector<1x1x256xf32>,
    %347 = vector.extract_strided_slice %242 {offsets = [13, 0], sizes = [1, 256], strides = [1, 1]} : vector<18x256xf32> to vector<1x256xf32>
    %cst_154 = arith.constant -1.000000e+00 : f32
    %348 = vector.broadcast %cst_154 : f32 to vector<1x256xf32>
    %349 = arith.addf %347, %348 : vector<1x256xf32>
    %c6_155 = arith.constant 6 : index
    %c0_156 = arith.constant 0 : index
    %c0_157 = arith.constant 0 : index
    %350 = vector.load %arg11[%c6_155, %c0_156, %c0_157] : memref<9x1x256xf32, #tpu.memory_space<vmem>>, vector<1x1x256xf32>
    %351 = vector.shape_cast %350 : vector<1x1x256xf32> to vector<1x256xf32>
    %352 = vector.shape_cast %349 : vector<1x256xf32> to vector<1x1x256xf32>
    tpu.vector_store %arg11[%c6_155, %c0_156, %c0_157], %352 {strides = array<i32>} : memref<9x1x256xf32, #tpu.memory_space<vmem>>, vector<1x1x256xf32>,
    %353 = vector.extract_strided_slice %244 {offsets = [24, 0], sizes = [4, 256], strides = [1, 1]} : vector<36x256xf32> to vector<4x256xf32>
    %c6_158 = arith.constant 6 : index
    %c0_159 = arith.constant 0 : index
    %c0_160 = arith.constant 0 : index
    %354 = vector.load %arg12[%c6_158, %c0_159, %c0_160] : memref<9x4x256xf32, #tpu.memory_space<vmem>>, vector<1x4x256xf32>
    %355 = vector.shape_cast %354 : vector<1x4x256xf32> to vector<4x256xf32>
    %356 = vector.shape_cast %353 : vector<4x256xf32> to vector<1x4x256xf32>
    tpu.vector_store %arg12[%c6_158, %c0_159, %c0_160], %356 {strides = array<i32>} : memref<9x4x256xf32, #tpu.memory_space<vmem>>, vector<1x4x256xf32>,
    %357 = vector.extract_strided_slice %242 {offsets = [14, 0], sizes = [1, 256], strides = [1, 1]} : vector<18x256xf32> to vector<1x256xf32>
    %cst_161 = arith.constant 1.000000e+00 : f32
    %358 = vector.broadcast %cst_161 : f32 to vector<1x256xf32>
    %359 = arith.addf %357, %358 : vector<1x256xf32>
    %c7 = arith.constant 7 : index
    %c0_162 = arith.constant 0 : index
    %c0_163 = arith.constant 0 : index
    %360 = vector.load %arg10[%c7, %c0_162, %c0_163] : memref<9x1x256xf32, #tpu.memory_space<vmem>>, vector<1x1x256xf32>
    %361 = vector.shape_cast %360 : vector<1x1x256xf32> to vector<1x256xf32>
    %362 = vector.shape_cast %359 : vector<1x256xf32> to vector<1x1x256xf32>
    tpu.vector_store %arg10[%c7, %c0_162, %c0_163], %362 {strides = array<i32>} : memref<9x1x256xf32, #tpu.memory_space<vmem>>, vector<1x1x256xf32>,
    %363 = vector.extract_strided_slice %242 {offsets = [15, 0], sizes = [1, 256], strides = [1, 1]} : vector<18x256xf32> to vector<1x256xf32>
    %cst_164 = arith.constant 0.000000e+00 : f32
    %364 = vector.broadcast %cst_164 : f32 to vector<1x256xf32>
    %365 = arith.addf %363, %364 : vector<1x256xf32>
    %c7_165 = arith.constant 7 : index
    %c0_166 = arith.constant 0 : index
    %c0_167 = arith.constant 0 : index
    %366 = vector.load %arg11[%c7_165, %c0_166, %c0_167] : memref<9x1x256xf32, #tpu.memory_space<vmem>>, vector<1x1x256xf32>
    %367 = vector.shape_cast %366 : vector<1x1x256xf32> to vector<1x256xf32>
    %368 = vector.shape_cast %365 : vector<1x256xf32> to vector<1x1x256xf32>
    tpu.vector_store %arg11[%c7_165, %c0_166, %c0_167], %368 {strides = array<i32>} : memref<9x1x256xf32, #tpu.memory_space<vmem>>, vector<1x1x256xf32>,
    %369 = vector.extract_strided_slice %244 {offsets = [28, 0], sizes = [4, 256], strides = [1, 1]} : vector<36x256xf32> to vector<4x256xf32>
    %c7_168 = arith.constant 7 : index
    %c0_169 = arith.constant 0 : index
    %c0_170 = arith.constant 0 : index
    %370 = vector.load %arg12[%c7_168, %c0_169, %c0_170] : memref<9x4x256xf32, #tpu.memory_space<vmem>>, vector<1x4x256xf32>
    %371 = vector.shape_cast %370 : vector<1x4x256xf32> to vector<4x256xf32>
    %372 = vector.shape_cast %369 : vector<4x256xf32> to vector<1x4x256xf32>
    tpu.vector_store %arg12[%c7_168, %c0_169, %c0_170], %372 {strides = array<i32>} : memref<9x4x256xf32, #tpu.memory_space<vmem>>, vector<1x4x256xf32>,
    %373 = vector.extract_strided_slice %242 {offsets = [16, 0], sizes = [1, 256], strides = [1, 1]} : vector<18x256xf32> to vector<1x256xf32>
    %cst_171 = arith.constant 1.000000e+00 : f32
    %374 = vector.broadcast %cst_171 : f32 to vector<1x256xf32>
    %375 = arith.addf %373, %374 : vector<1x256xf32>
    %c8 = arith.constant 8 : index
    %c0_172 = arith.constant 0 : index
    %c0_173 = arith.constant 0 : index
    %376 = vector.load %arg10[%c8, %c0_172, %c0_173] : memref<9x1x256xf32, #tpu.memory_space<vmem>>, vector<1x1x256xf32>
    %377 = vector.shape_cast %376 : vector<1x1x256xf32> to vector<1x256xf32>
    %378 = vector.shape_cast %375 : vector<1x256xf32> to vector<1x1x256xf32>
    tpu.vector_store %arg10[%c8, %c0_172, %c0_173], %378 {strides = array<i32>} : memref<9x1x256xf32, #tpu.memory_space<vmem>>, vector<1x1x256xf32>,
    %379 = vector.extract_strided_slice %242 {offsets = [17, 0], sizes = [1, 256], strides = [1, 1]} : vector<18x256xf32> to vector<1x256xf32>
    %cst_174 = arith.constant 1.000000e+00 : f32
    %380 = vector.broadcast %cst_174 : f32 to vector<1x256xf32>
    %381 = arith.addf %379, %380 : vector<1x256xf32>
    %c8_175 = arith.constant 8 : index
    %c0_176 = arith.constant 0 : index
    %c0_177 = arith.constant 0 : index
    %382 = vector.load %arg11[%c8_175, %c0_176, %c0_177] : memref<9x1x256xf32, #tpu.memory_space<vmem>>, vector<1x1x256xf32>
    %383 = vector.shape_cast %382 : vector<1x1x256xf32> to vector<1x256xf32>
    %384 = vector.shape_cast %381 : vector<1x256xf32> to vector<1x1x256xf32>
    tpu.vector_store %arg11[%c8_175, %c0_176, %c0_177], %384 {strides = array<i32>} : memref<9x1x256xf32, #tpu.memory_space<vmem>>, vector<1x1x256xf32>,
    %385 = vector.extract_strided_slice %244 {offsets = [32, 0], sizes = [4, 256], strides = [1, 1]} : vector<36x256xf32> to vector<4x256xf32>
    %c8_178 = arith.constant 8 : index
    %c0_179 = arith.constant 0 : index
    %c0_180 = arith.constant 0 : index
    %386 = vector.load %arg12[%c8_178, %c0_179, %c0_180] : memref<9x4x256xf32, #tpu.memory_space<vmem>>, vector<1x4x256xf32>
    %387 = vector.shape_cast %386 : vector<1x4x256xf32> to vector<4x256xf32>
    %388 = vector.shape_cast %385 : vector<4x256xf32> to vector<1x4x256xf32>
    tpu.vector_store %arg12[%c8_178, %c0_179, %c0_180], %388 {strides = array<i32>} : memref<9x4x256xf32, #tpu.memory_space<vmem>>, vector<1x4x256xf32>,
    %389 = tpu.iota {dimensions = array<i32: 0>} : vector<256x256xi32>
    %cst_181 = arith.constant 0.000000e+00 : f32
    %390 = vector.broadcast %cst_181 : f32 to vector<4x256xf32>
    %c0_i32_182 = arith.constant 0 : i32
    %c9_i32 = arith.constant 9 : i32
    %391 = arith.addi %c0_i32_182, %c9_i32 : i32
    %c1_i32_183 = arith.constant 1 : i32
    %392 = scf.for %arg13 = %c0_i32_182 to %391 step %c1_i32_183 iter_args(%arg14 = %390) -> (vector<4x256xf32>)  : i32 {
      %408 = arith.index_cast %arg13 : i32 to index
      %c0_193 = arith.constant 0 : index
      %c0_194 = arith.constant 0 : index
      %409 = vector.load %arg10[%408, %c0_193, %c0_194] : memref<9x1x256xf32, #tpu.memory_space<vmem>>, vector<1x1x256xf32>
      %410 = vector.shape_cast %409 : vector<1x1x256xf32> to vector<1x256xf32>
      %411 = arith.addf %4, %410 : vector<1x256xf32>
      %412 = arith.index_cast %arg13 : i32 to index
      %c0_195 = arith.constant 0 : index
      %c0_196 = arith.constant 0 : index
      %413 = vector.load %arg11[%412, %c0_195, %c0_196] : memref<9x1x256xf32, #tpu.memory_space<vmem>>, vector<1x1x256xf32>
      %414 = vector.shape_cast %413 : vector<1x1x256xf32> to vector<1x256xf32>
      %415 = arith.addf %5, %414 : vector<1x256xf32>
      %416 = math.floor %411 : vector<1x256xf32>
      %417 = math.floor %415 : vector<1x256xf32>
      %418 = arith.subf %411, %416 : vector<1x256xf32>
      %419 = arith.subf %415, %417 : vector<1x256xf32>
      %420 = arith.fptosi %416 : vector<1x256xf32> to vector<1x256xi32>
      %421 = arith.fptosi %417 : vector<1x256xf32> to vector<1x256xi32>
      %c0_i32_197 = arith.constant 0 : i32
      %422 = vector.broadcast %c0_i32_197 : i32 to vector<1x256xi32>
      %423 = arith.cmpi sge, %420, %422 : vector<1x256xi32>
      %c16_i32_198 = arith.constant 16 : i32
      %424 = vector.broadcast %c16_i32_198 : i32 to vector<1x256xi32>
      %425 = arith.cmpi slt, %420, %424 : vector<1x256xi32>
      %426 = arith.andi %423, %425 : vector<1x256xi1>
      %c-1_i32_199 = arith.constant -1 : i32
      %427 = vector.broadcast %c-1_i32_199 : i32 to vector<1x256xi32>
      %428 = arith.cmpi sge, %420, %427 : vector<1x256xi32>
      %c15_i32 = arith.constant 15 : i32
      %429 = vector.broadcast %c15_i32 : i32 to vector<1x256xi32>
      %430 = arith.cmpi slt, %420, %429 : vector<1x256xi32>
      %431 = arith.andi %428, %430 : vector<1x256xi1>
      %c0_i32_200 = arith.constant 0 : i32
      %432 = vector.broadcast %c0_i32_200 : i32 to vector<1x256xi32>
      %433 = arith.cmpi sge, %421, %432 : vector<1x256xi32>
      %c16_i32_201 = arith.constant 16 : i32
      %434 = vector.broadcast %c16_i32_201 : i32 to vector<1x256xi32>
      %435 = arith.cmpi slt, %421, %434 : vector<1x256xi32>
      %436 = arith.andi %433, %435 : vector<1x256xi1>
      %c-1_i32_202 = arith.constant -1 : i32
      %437 = vector.broadcast %c-1_i32_202 : i32 to vector<1x256xi32>
      %438 = arith.cmpi sge, %421, %437 : vector<1x256xi32>
      %c15_i32_203 = arith.constant 15 : i32
      %439 = vector.broadcast %c15_i32_203 : i32 to vector<1x256xi32>
      %440 = arith.cmpi slt, %421, %439 : vector<1x256xi32>
      %441 = arith.andi %438, %440 : vector<1x256xi1>
      %442 = arith.andi %426, %436 : vector<1x256xi1>
      %cst_204 = arith.constant 1.000000e+00 : f32
      %443 = vector.broadcast %cst_204 : f32 to vector<1x256xf32>
      %444 = arith.subf %443, %418 : vector<1x256xf32>
      %cst_205 = arith.constant 1.000000e+00 : f32
      %445 = vector.broadcast %cst_205 : f32 to vector<1x256xf32>
      %446 = arith.subf %445, %419 : vector<1x256xf32>
      %447 = arith.mulf %444, %446 : vector<1x256xf32>
      %cst_206 = arith.constant 0.000000e+00 : f32
      %448 = vector.broadcast %cst_206 : f32 to vector<1x256xf32>
      %449 = arith.select %442, %447, %448 : vector<1x256xi1>, vector<1x256xf32>
      %450 = arith.andi %426, %441 : vector<1x256xi1>
      %cst_207 = arith.constant 1.000000e+00 : f32
      %451 = vector.broadcast %cst_207 : f32 to vector<1x256xf32>
      %452 = arith.subf %451, %418 : vector<1x256xf32>
      %453 = arith.mulf %452, %419 : vector<1x256xf32>
      %cst_208 = arith.constant 0.000000e+00 : f32
      %454 = vector.broadcast %cst_208 : f32 to vector<1x256xf32>
      %455 = arith.select %450, %453, %454 : vector<1x256xi1>, vector<1x256xf32>
      %456 = arith.andi %431, %436 : vector<1x256xi1>
      %cst_209 = arith.constant 1.000000e+00 : f32
      %457 = vector.broadcast %cst_209 : f32 to vector<1x256xf32>
      %458 = arith.subf %457, %419 : vector<1x256xf32>
      %459 = arith.mulf %418, %458 : vector<1x256xf32>
      %cst_210 = arith.constant 0.000000e+00 : f32
      %460 = vector.broadcast %cst_210 : f32 to vector<1x256xf32>
      %461 = arith.select %456, %459, %460 : vector<1x256xi1>, vector<1x256xf32>
      %462 = arith.andi %431, %441 : vector<1x256xi1>
      %463 = arith.mulf %418, %419 : vector<1x256xf32>
      %cst_211 = arith.constant 0.000000e+00 : f32
      %464 = vector.broadcast %cst_211 : f32 to vector<1x256xf32>
      %465 = arith.select %462, %463, %464 : vector<1x256xi1>, vector<1x256xf32>
      %c16_i32_212 = arith.constant 16 : i32
      %466 = vector.broadcast %c16_i32_212 : i32 to vector<1x256xi32>
      %467 = arith.muli %420, %466 : vector<1x256xi32>
      %468 = arith.addi %467, %421 : vector<1x256xi32>
      %469 = vector.broadcast %468 : vector<1x256xi32> to vector<256x256xi32>
      %470 = arith.subi %389, %469 : vector<256x256xi32>
      %c0_i32_213 = arith.constant 0 : i32
      %471 = vector.broadcast %c0_i32_213 : i32 to vector<256x256xi32>
      %472 = arith.cmpi eq, %470, %471 : vector<256x256xi32>
      %c1_i32_214 = arith.constant 1 : i32
      %473 = vector.broadcast %c1_i32_214 : i32 to vector<256x256xi32>
      %474 = arith.cmpi eq, %470, %473 : vector<256x256xi32>
      %c16_i32_215 = arith.constant 16 : i32
      %475 = vector.broadcast %c16_i32_215 : i32 to vector<256x256xi32>
      %476 = arith.cmpi eq, %470, %475 : vector<256x256xi32>
      %c17_i32 = arith.constant 17 : i32
      %477 = vector.broadcast %c17_i32 : i32 to vector<256x256xi32>
      %478 = arith.cmpi eq, %470, %477 : vector<256x256xi32>
      %cst_216 = arith.constant 0.000000e+00 : f32
      %479 = vector.shape_cast %465 : vector<1x256xf32> to vector<1x256xf32>
      %480 = vector.broadcast %479 : vector<1x256xf32> to vector<256x256xf32>
      %481 = vector.broadcast %cst_216 : f32 to vector<256x256xf32>
      %482 = arith.select %478, %480, %481 : vector<256x256xi1>, vector<256x256xf32>
      %483 = vector.shape_cast %461 : vector<1x256xf32> to vector<1x256xf32>
      %484 = vector.broadcast %483 : vector<1x256xf32> to vector<256x256xf32>
      %485 = arith.select %476, %484, %482 : vector<256x256xi1>, vector<256x256xf32>
      %486 = vector.shape_cast %455 : vector<1x256xf32> to vector<1x256xf32>
      %487 = vector.broadcast %486 : vector<1x256xf32> to vector<256x256xf32>
      %488 = arith.select %474, %487, %485 : vector<256x256xi1>, vector<256x256xf32>
      %489 = vector.shape_cast %449 : vector<1x256xf32> to vector<1x256xf32>
      %490 = vector.broadcast %489 : vector<1x256xf32> to vector<256x256xf32>
      %491 = arith.select %472, %490, %488 : vector<256x256xi1>, vector<256x256xf32>
      %492 = arith.index_cast %arg13 : i32 to index
      %c0_217 = arith.constant 0 : index
      %c0_218 = arith.constant 0 : index
      %493 = vector.load %arg12[%492, %c0_217, %c0_218] : memref<9x4x256xf32, #tpu.memory_space<vmem>>, vector<1x4x256xf32>
      %494 = vector.shape_cast %493 : vector<1x4x256xf32> to vector<4x256xf32>
      %cst_219 = arith.constant dense<0.000000e+00> : vector<4x256xf32>
      %495 = tpu.matmul %494, %491, %cst_219 {dimension_numbers = #tpu.dot_dimension_numbers<[1], [0], [0], [1], [0, 0, 1, 1], [], []>} : vector<4x256xf32>, vector<256x256xf32>, vector<4x256xf32> -> vector<4x256xf32>
      %496 = arith.addf %arg14, %495 : vector<4x256xf32>
      scf.yield %496 : vector<4x256xf32>
    }
    %c9_i32_184 = arith.constant 9 : i32
    %c0_185 = arith.constant 0 : index
    %c0_186 = arith.constant 0 : index
    %393 = vector.load %arg7[%c0_185, %c0_186] : memref<4x1xf32, #tpu.memory_space<vmem>>, vector<4x1xf32>
    %394 = vector.broadcast %393 : vector<4x1xf32> to vector<4x256xf32>
    %395 = arith.mulf %392, %394 : vector<4x256xf32>
    %c0_187 = arith.constant 0 : index
    %c0_188 = arith.constant 0 : index
    %396 = vector.load %arg8[%c0_187, %c0_188] : memref<4x1xf32, #tpu.memory_space<vmem>>, vector<4x1xf32>
    %397 = vector.broadcast %396 : vector<4x1xf32> to vector<4x256xf32>
    %398 = arith.addf %395, %397 : vector<4x256xf32>
    %399 = arith.negf %398 : vector<4x256xf32>
    %400 = math.exp %399 : vector<4x256xf32>
    %cst_189 = arith.constant 1.000000e+00 : f32
    %401 = vector.broadcast %cst_189 : f32 to vector<4x256xf32>
    %402 = arith.addf %401, %400 : vector<4x256xf32>
    %403 = arith.divf %401, %402 : vector<4x256xf32>
    %404 = arith.mulf %1, %403 : vector<4x256xf32>
    %c0_190 = arith.constant 0 : index
    %c0_191 = arith.constant 0 : index
    %c0_192 = arith.constant 0 : index
    %405 = vector.load %arg9[%c0_190, %c0_191, %c0_192] : memref<1x4x256xf32, #tpu.memory_space<vmem>>, vector<1x4x256xf32>
    %406 = vector.shape_cast %405 : vector<1x4x256xf32> to vector<4x256xf32>
    %407 = vector.shape_cast %404 : vector<4x256xf32> to vector<1x4x256xf32>
    tpu.vector_store %arg9[%c0_190, %c0_191, %c0_192], %407 {strides = array<i32>} : memref<1x4x256xf32, #tpu.memory_space<vmem>>, vector<1x4x256xf32>,
    return
  }
  func.func @transform_0(%arg0: i32) -> (i32, i32, i32) {
    %c0_i32 = arith.constant 0 : i32
    %c0_i32_0 = arith.constant 0 : i32
    %c0_i32_1 = arith.constant 0 : i32
    return %arg0, %c0_i32, %c0_i32_0 : i32, i32, i32
  }
  func.func @transform_1(%arg0: i32) -> (i32, i32) {
    %c0_i32 = arith.constant 0 : i32
    %c0_i32_0 = arith.constant 0 : i32
    %c0_i32_1 = arith.constant 0 : i32
    return %c0_i32, %c0_i32_0 : i32, i32
  }
  func.func @transform_2(%arg0: i32) -> (i32, i32) {
    %c0_i32 = arith.constant 0 : i32
    %c0_i32_0 = arith.constant 0 : i32
    %c0_i32_1 = arith.constant 0 : i32
    return %c0_i32, %c0_i32_0 : i32, i32
  }
  func.func @transform_3(%arg0: i32) -> (i32, i32) {
    %c0_i32 = arith.constant 0 : i32
    %c0_i32_0 = arith.constant 0 : i32
    %c0_i32_1 = arith.constant 0 : i32
    return %c0_i32, %c0_i32_0 : i32, i32
  }
  func.func @transform_4(%arg0: i32) -> (i32, i32) {
    %c0_i32 = arith.constant 0 : i32
    %c0_i32_0 = arith.constant 0 : i32
    %c0_i32_1 = arith.constant 0 : i32
    return %c0_i32, %c0_i32_0 : i32, i32
  }
  func.func @transform_5(%arg0: i32) -> (i32, i32) {
    %c0_i32 = arith.constant 0 : i32
    %c0_i32_0 = arith.constant 0 : i32
    %c0_i32_1 = arith.constant 0 : i32
    return %c0_i32, %c0_i32_0 : i32, i32
  }
  func.func @transform_6(%arg0: i32) -> (i32, i32) {
    %c0_i32 = arith.constant 0 : i32
    %c0_i32_0 = arith.constant 0 : i32
    %c0_i32_1 = arith.constant 0 : i32
    return %c0_i32, %c0_i32_0 : i32, i32
  }
  func.func @transform_7(%arg0: i32) -> (i32, i32) {
    %c0_i32 = arith.constant 0 : i32
    %c0_i32_0 = arith.constant 0 : i32
    %c0_i32_1 = arith.constant 0 : i32
    return %c0_i32, %c0_i32_0 : i32, i32
  }
  func.func @transform_8(%arg0: i32) -> (i32, i32, i32) {
    %c0_i32 = arith.constant 0 : i32
    %c0_i32_0 = arith.constant 0 : i32
    %c0_i32_1 = arith.constant 0 : i32
    return %arg0, %c0_i32, %c0_i32_0 : i32, i32, i32
  }
}

</mosaic_0001>

<bundles_post_ra>
// kernel: spatial_window_attn.1
= control target key start
LH: loop header
LB: loop body
LE: loop exit
PB: predicated region body
PF: predicated region fallthrough
CT: control target
= control target key end

     0   :  { %s2233_s27 = smov 0   ;;  %s3262_s0 = inlined_call_operand.vmem [shape: f32[2,4,256], index: 0, kind: input, shape index: {}]   ;;  %s3263_s1 = inlined_call_operand.vmem [shape: s32[1,256], index: 1, kind: input, shape index: {}]   ;;  %s3264_s2 = inlined_call_operand.vmem [shape: s32[1,256], index: 2, kind: input, shape index: {}]   ;;  %s3265_s3 = inlined_call_operand.vmem [shape: f32[18,36], index: 3, kind: input, shape index: {}]   ;;  %s3266_s4 = inlined_call_operand.vmem [shape: f32[18,1], index: 4, kind: input, shape index: {}]   ;;  %s3267_s5 = inlined_call_operand.vmem [shape: f32[36,4], index: 5, kind: input, shape index: {}]   ;;  %s3268_s6 = inlined_call_operand.vmem [shape: f32[4,1], index: 6, kind: input, shape index: {}]   ;;  %s3269_s7 = inlined_call_operand.vmem [shape: f32[4,1], index: 7, kind: input, shape index: {}]   ;;  %s3270_s8 = inlined_call_operand.vmem [shape: f32[2,4,256], index: 8, kind: output, shape index: {}]  }
   0x1 LB: > { %s2055_s28 = sadd.s32 4294967295, %s2163_s27   ;;  %p2059_p0 = scmp.ge.s32.totalorder %s2163_s27, 1  ;;  %s2163_s27 = sphi %s2233_s27, %s18_s27  }
   0x2   : > { %p262_p1 = scmp.lt.s32.totalorder %s2163_s27, 3 }
   0x4   : > { %p263_p2 = pnand %p2059_p0, %p262_p1 }
   0x6   : > { %266 = sbr.rel (%p263_p2) target bundleno = 920 (0x398), region = 52 }
   0xb   : > { %p296_p3 = scmp.lt.s32.totalorder %s2055_s28, 1  ;;  %v2244_v0 = vld [vmem:[%s3263_s1] sm:$0x3]  ;;  %v3275_v1 = vlaneseq  ;;  %v3278_v4 = vmov 0   ;;  %s2178_s18 = smov 111   ;;  %vm3271_vm0 = vcmask 1043456  }
   0xc   : > { %3281 = vst [vmem:[#allocation5_spill] sm:$0xff] %v2244_v0  ;;  %v2249_v2 = vld [vmem:[%s3264_s2] sm:$0x3]  ;;  %2132 = vset.pattern.permute.xlu0 %v3278_v4  ;;  %2133 = vset.pattern.permute.xlu1 %v3278_v4  ;;  %s2179_s19 = smov 112   ;;  %vm400_vm1 = vcmp.ge.s32.totalorder %v2244_v0, 0  ;;  %s2180_s20 = smov 127  }
   0xd   : > { %s3353_s28 = smov (!%p296_p3, %s2055_s28), 1  ;;  %v2256_v6 = vshrl.u32 %v3275_v1, 7  ;;  %vm401_vm2 = vcmp.lt.s32.totalorder %v2244_v0, 16  ;;  %vm345_vm4 = vcmp.ge.s32.totalorder %v2249_v2, 0  ;;  %vm3274_vm5 = vcmp.lt.s32.totalorder %v2249_v2, 16  ;;  %s2181_s21 = smov 113  }
   0xe   : > { %s2082_s11 = sshll.u32 %s3353_s28, 3  ;;  %vm2381_vm3 = vmand %vm400_vm1, %vm401_vm2  ;;  %s2182_s22 = smov 1   ;;  %v3276_v50 = vmov 0.0   ;;  %v701_v51 = vld [vmem:[%s3267_s5] sm:$0xff]  ;;  %vm706_vm10 = vcmask 31744   ;;  %v702_v52 = vld [vmem:[%s3267_s5 + $0x8] sm:$0xff] }
   0xf   : > { %v2259_v7 = vadd.s32 8, %v2256_v6  ;;  %s300_s14 = scalar_lea.vmem %s3262_s0, %s2082_s11  ;;  %s2267_s17 = scalar_lea.vmem %s3270_s8, %s2082_s11  ;;  %v2270_v8 = vadd.s32 16, %v2256_v6  ;;  %v2273_v9 = vadd.s32 24, %v2256_v6  ;;  %v2276_v10 = vadd.s32 32, %v2256_v6  ;;  %vm428_vm6 = vmand %vm2381_vm3, %vm345_vm4  ;;  %682 = vmatprep.mubr.f32.mxu0 %v3276_v50  ;;  %790 = vmatprep.mubr.f32.mxu1 %v3276_v50  ;;  %v703_v53 = vld [vmem:[%s3267_s5 + $0x10] sm:$0xff]  ;;  %v584_v54 = vld [vmem:[%s3266_s4] sm:$0xff] }
  0x10   : > { %v2279_v11 = vadd.s32 40, %v2256_v6  ;;  %v2281_v12 = vld [vmem:[%s300_s14] sm:$0xff]  ;;  %v2284_v13 = vadd.s32 48, %v2256_v6  ;;  %v2287_v14 = vadd.s32 56, %v2256_v6  ;;  %v2290_v15 = vadd.s32 64, %v2256_v6  ;;  %vm429_vm7 = vmand %vm428_vm6, %vm3274_vm5  ;;  %s2184_s25 = smov 16  }
  0x11   : > { %525 = vrot.lane.b32.xlu1 %v2281_v12, %s2178_s18  ;;  %500 = vrot.lane.b32.xlu0 %v2281_v12, %s2179_s19  ;;  %v2297_v16 = vcombine.high %v2281_v12, %v2281_v12  ;;  %v2300_v17 = vadd.s32 72, %v2256_v6  ;;  %v2303_v18 = vadd.s32 80, %v2256_v6  ;;  %v2306_v19 = vadd.s32 88, %v2256_v6  ;;  %s2185_s29 = smov 15   ;;  %s2186_s10 = smov 17   ;;  %v585_v55 = vld [vmem:[%s3266_s4 + $0x8] sm:$0xff] }
  0x12   : > { %v2309_v20 = vadd.s32 96, %v2256_v6  ;;  %v2312_v21 = vadd.s32 104, %v2256_v6  ;;  %v2315_v22 = vadd.s32 112, %v2256_v6  ;;  %v2318_v23 = vadd.s32 120, %v2256_v6  ;;  %v704_v56 = vld [vmem:[%s3267_s5 + $0x18] sm:$0xff] }
  0x13   : > { %v2321_v24 = vadd.s32 128, %v2256_v6  ;;  %v2324_v25 = vadd.s32 136, %v2256_v6  ;;  %2069 = vmatprep.subr.msk.mxu1 %vm3271_vm0, %v2297_v16  ;;  %v2329_v26 = vadd.s32 144, %v2256_v6  ;;  %v2332_v27 = vadd.s32 152, %v2256_v6  ;;  %v586_v57 = vld [vmem:[%s3266_s4 + $0x10] sm:$0x3] }
  0x14   : > { %v2335_v28 = vadd.s32 160, %v2256_v6  ;;  %2070 = vmatpush1.msk.msra.mxu1 %vm3271_vm0, %v2281_v12  ;;  %v2343_v29 = vadd.s32 168, %v2256_v6  ;;  %v2346_v30 = vadd.s32 176, %v2256_v6  ;;  %v2349_v31 = vadd.s32 184, %v2256_v6  ;;  %v705_v58 = vld [vmem:[%s3267_s5 + $0x20] sm:$0xf] }
  0x15   : > { %446 = vrot.lane.b32.xlu0 %v2281_v12, %s2180_s20  ;;  %527 = vrot.lane.b32.xlu1 %v2297_v16, %s2178_s18  ;;  %v2352_v32 = vadd.s32 192, %v2256_v6  ;;  %v2355_v33 = vadd.s32 200, %v2256_v6  ;;  %v2358_v34 = vadd.s32 208, %v2256_v6  ;;  %v2361_v35 = vadd.s32 216, %v2256_v6 }
  0x16   : > { %v2364_v36 = vadd.s32 224, %v2256_v6  ;;  %v2367_v37 = vadd.s32 232, %v2256_v6  ;;  %v2370_v38 = vadd.s32 240, %v2256_v6  ;;  %v2373_v39 = vadd.s32 248, %v2256_v6  ;;  %2071 = vmatmul.mubr.msk.f32.vlgmr.msra.gmra.mxu1 %vm706_vm10, %v701_v51 }
  0x17   : > { %v2392_v41 = vsub.s32 1, %v2256_v6  ;;  %v2395_v42 = vsub.s32 0, %v2256_v6  ;;  %v430_v43 = vsel %vm429_vm7, 1, %v3278_v4  ;;  %796 = vmatprep.mubr.f32.mxu1 %v3276_v50  ;;  %v469_v59 = vadd.s32 1, %v2244_v0 }
  0x18   : > { %v2463_v60 = vadd.s32 1, %v2249_v2  ;;  %v2470_v61 = vadd.s32 4294967295, %v2249_v2  ;;  %v311_v63 = vadd.s32 4294967295, %v2244_v0 }
  0x19   : > { %448 = vrot.lane.b32.xlu1 %v2297_v16, %s2180_s20  ;;  %502 = vrot.lane.b32.xlu0 %v2297_v16, %s2179_s19  ;;  %v438_v44 = vrot.slane %v430_v43, %v2392_v41  ;;  %v434_v45 = vrot.slane %v430_v43, %v2395_v42  ;;  %vm470_vm11 = vcmp.ge.s32.totalorder %v469_v59, 0  ;;  %vm471_vm12 = vcmp.lt.s32.totalorder %v469_v59, 16 }
  0x1a   : > { %2072 = vmatmul.mubr.msk.f32.gmra.mxu1 %vm706_vm10, %v702_v52  ;;  %vm373_vm13 = vcmp.ge.s32.totalorder %v2463_v60, 0  ;;  %vm472_vm14 = vmand %vm470_vm11, %vm471_vm12  ;;  %vm3272_vm15 = vcmp.lt.s32.totalorder %v2463_v60, 16 }
  0x1b   : > { %vm2404_vm8 = vcmp.eq.s32.totalorder %v438_v44, 1  ;;  %vm2408_vm9 = vcmp.eq.s32.totalorder %v434_v45, 1  ;;  %802 = vmatprep.mubr.f32.mxu1 %v3276_v50  ;;  %vm523_vm1 = vmand %vm472_vm14, %vm373_vm13 }
  0x1c   : > { %v443_v48 = vsel %vm2404_vm8, %v2297_v16, 0.0  ;;  %v442_v49 = vsel %vm2408_vm9, %v2281_v12, 0.0  ;;  %vm524_vm2 = vmand %vm523_vm1, %vm3272_vm15  ;;  %vm318_vm1 = vcmp.lt.s32.totalorder %v2470_v61, 16  ;;  %vm3315_vm8 = vcmp.ge.s32.totalorder %v2470_v61, 0 }
  0x1d   : > { %477 = vrot.lane.b32.xlu1 %v2297_v16, %s2181_s21  ;;  %475 = vrot.lane.b32.xlu0 %v2281_v12, %s2181_s21  ;;  %vm444_vm6 = vmand %vm2381_vm3, %vm373_vm13  ;;  %v535_v62 = vsel %vm524_vm2, 1, %v3278_v4 }
  0x1e   : > { %2073 = vmatmul.mubr.msk.f32.gmra.mxu1 %vm706_vm10, %v703_v53  ;;  %vm498_vm7 = vmand %vm472_vm14, %vm345_vm4  ;;  %v543_v43 = vrot.slane %v535_v62, %v2392_v41  ;;  %v539_v44 = vrot.slane %v535_v62, %v2395_v42 }
  0x1f   : > { %808 = vmatprep.mubr.f32.mxu1 %v3276_v50  ;;  %vm445_vm11 = vmand %vm444_vm6, %vm3272_vm15  ;;  %vm529_vm6 = vcmask 908288   ;;  %vm313_vm15 = vcmp.lt.s32.totalorder %v311_v63, 16 }
  0x20   : > { %vm499_vm12 = vmand %vm498_vm7, %vm3274_vm5  ;;  %v456_v45 = vsel %vm445_vm11, 1, %v3278_v4  ;;  %vm312_vm7 = vcmp.ge.s32.totalorder %v311_v63, 0  ;;  %vm2502_vm11 = vcmp.eq.s32.totalorder %v543_v43, 1 }
  0x21   : > { %408 = vrot.lane.b32.xlu1 %v2281_v12, %s2182_s22  ;;  %405 = vrot.lane.b32.xlu0 %v2297_v16, %s2182_s22  ;;  %v510_v53 = vsel %vm499_vm12, 1, %v3278_v4  ;;  %vm2506_vm12 = vcmp.eq.s32.totalorder %v539_v44, 1  ;;  %vm2519_vm5 = vmand %vm312_vm7, %vm313_vm15 }
  0x22   : > { %2074 = vmatmul.mubr.msk.f32.gmra.mxu1 %vm706_vm10, %v704_v56  ;;  %v518_v59 = vrot.slane %v510_v53, %v2392_v41 }
  0x23   : > { %814 = vmatprep.mubr.f32.mxu1 %v3276_v50 }
  0x24   : > { %vm2540_vm7 = vcmp.eq.s32.totalorder %v518_v59, 1 }
  0x25   : > { %352 = vrot.lane.b32.xlu1 %v2281_v12, %s2184_s25  ;;  %349 = vrot.lane.b32.xlu0 %v2297_v16, %s2184_s25 }
  0x26   : > { %2075 = vmatmul.mubr.msk.f32.gmra.mxu1 %vm706_vm10, %v705_v58  ;;  %vm3273_vm10 = vcmp.ge.s32.totalorder %v2470_v61, 0  ;;  %v514_v58 = vrot.slane %v510_v53, %v2395_v42 }
  0x27   : > { %vm473_vm0 = vmand %vm472_vm14, %vm3273_vm10 }
  0x28   : > { %vm474_vm2 = vmand %vm473_vm0, %vm318_vm1  ;;  %vm2536_vm15 = vcmp.eq.s32.totalorder %v514_v58, 1 }
  0x29   : > { %380 = vrot.lane.b32.xlu1 %v2281_v12, %s2185_s29  ;;  %377 = vrot.lane.b32.xlu0 %v2297_v16, %s2185_s29  ;;  %vm403_vm14 = vmand %vm2381_vm3, %vm3273_vm10  ;;  %v485_v5 = vsel %vm474_vm2, 1, %v3278_v4  ;;  %vm450_vm3 = vcmask 1039360   ;;  %vm504_vm10 = vcmask 916480   ;;  %s2750_s29 = smov 0  }
  0x2a   : > { %vm2515_vm0 = vmand %vm403_vm14, %vm318_vm1 }
  0x2b   : > { %v415_v58 = vsel %vm2515_vm0, 1, %v3278_v4 }
  0x2d   : > { %325 = vrot.lane.b32.xlu1 %v2281_v12, %s2186_s10  ;;  %322 = vrot.lane.b32.xlu0 %v2297_v16, %s2186_s10  ;;  %v423_v16 = vrot.slane %v415_v58, %v2392_v41 }
  0x31   : > { %589 = vperm.xlu0 %2132, %v584_v54   ;;  %594 = vperm.xlu1 %2133, %v585_v55   ;;  %v460_v54 = vrot.slane %v456_v45, %v2395_v42  ;;  %v464_v55 = vrot.slane %v456_v45, %v2392_v41 }
  0x33   : > { %vm2527_vm2 = vcmp.eq.s32.totalorder %v460_v54, 1  ;;  %vm2531_vm14 = vcmp.eq.s32.totalorder %v464_v55, 1  ;;  %v493_v54 = vrot.slane %v485_v5, %v2392_v41 }
  0x35   : > { %599 = vperm.xlu1 %2133, %v586_v57   ;;  %v489_v57 = vrot.slane %v485_v5, %v2395_v42 }
  0x83   : > { %v526_v51 = vpop.permute.xlu1 %525  ;;  %v501_v52 = vpop.permute.xlu0 %500 }
  0x87   : > { %v447_v40 = vpop.permute.xlu0 %446  ;;  %v528_v62 = vpop.permute.xlu1 %527 }
  0x88   : > { %v530_v43 = vsel %vm529_vm6, %v526_v51, %v528_v62  ;;  %v534_v45 = vsel %vm529_vm6, %v528_v62, %v526_v51  ;;  %vm3300_vm6 = vcmask 1043456  }
  0x89   : > { %v547_v53 = vsel %vm2502_vm11, %v534_v45, 0.0  ;;  %v546_v3 = vsel %vm2506_vm12, %v530_v43, 0.0  ;;  %vm3305_vm11 = vmmov %vm3300_vm6  ;;  %vm479_vm12 = vcmask 924672  }
  0x8a   : > { %2064 = vmatprep.subr.msk.mxu0 %vm3300_vm6, %v547_v53  ;;  %vm346_vm6 = vmand %vm2519_vm5, %vm345_vm4  ;;  %vm2570_vm4 = vcmp.eq.s32.totalorder %v489_v57, 1 }
  0x8b   : > { %2065 = vmatpush1.msk.msra.mxu0 %vm3305_vm11, %v546_v3  ;;  %v449_v55 = vpop.permute.xlu1 %448  ;;  %v503_v62 = vpop.permute.xlu0 %502  ;;  %vm374_vm11 = vmand %vm2519_vm5, %vm373_vm13  ;;  %vm3310_vm13 = vcmp.lt.s32.totalorder %v2249_v2, 16 }
  0x8c   : > { %v451_v59 = vsel %vm450_vm3, %v447_v40, %v449_v55  ;;  %v455_v43 = vsel %vm450_vm3, %v449_v55, %v447_v40  ;;  %v505_v5 = vsel %vm504_vm10, %v501_v52, %v503_v62  ;;  %v509_v3 = vsel %vm504_vm10, %v503_v62, %v501_v52  ;;  %vm348_vm0 = vmand %vm346_vm6, %vm3310_vm13 }
  0x8d   : > { %v467_v63 = vsel %vm2527_vm2, %v451_v59, 0.0  ;;  %v468_v45 = vsel %vm2531_vm14, %v455_v43, 0.0  ;;  %v521_v53 = vsel %vm2536_vm15, %v505_v5, 0.0  ;;  %v522_v40 = vsel %vm2540_vm7, %v509_v3, 0.0  ;;  %vm317_vm7 = vmand %vm2519_vm5, %vm3315_vm8 }
  0x8e   : > { %v562_v55 = vrot.slane %v467_v63, 4  ;;  %v563_v4 = vrot.slane %v468_v45, 4  ;;  %vm2574_vm10 = vcmp.eq.s32.totalorder %v493_v54, 1  ;;  %v568_v1 = vrot.slane %v521_v53, 4  ;;  %vm319_vm5 = vmand %vm317_vm7, %vm318_vm1 }
  0x8f   : > { %v569_v50 = vrot.slane %v522_v40, 4  ;;  %v478_v51 = vpop.permute.xlu1 %477  ;;  %v476_v59 = vpop.permute.xlu0 %475  ;;  %vm3311_vm3 = vcmp.lt.s32.totalorder %v2463_v60, 16  ;;  %vm3312_vm14 = vcmask 1043456   ;;  %v419_v3 = vrot.slane %v415_v58, %v2395_v42 }
  0x90   : > { %vm376_vm2 = vmand %vm374_vm11, %vm3311_vm3  ;;  %v480_v56 = vsel %vm479_vm12, %v476_v59, %v478_v51  ;;  %v484_v57 = vsel %vm479_vm12, %v478_v51, %v476_v59  ;;  %v578_v54 = vsel %vm3312_vm14, %v443_v48, %v563_v4  ;;  %v3314_v63 = vmov 0  }
  0x91   : > { %vm3313_vm15 = vmmov %vm3312_vm14  ;;  %v496_v60 = vsel %vm2570_vm4, %v480_v56, 0.0  ;;  %v497_v5 = vsel %vm2574_vm10, %v484_v57, 0.0  ;;  %v359_v46 = vsel %vm348_vm0, 1, %v3314_v63  ;;  %v387_v48 = vsel %vm376_vm2, 1, %v3314_v63 }
  0x92   : > { %v577_v43 = vsel %vm3313_vm15, %v442_v49, %v562_v55  ;;  %vm3316_vm12 = vmmov %vm3312_vm14  ;;  %vm410_vm6 = vcmask 7168   ;;  %v363_v53 = vrot.slane %v359_v46, %v2395_v42  ;;  %v367_v40 = vrot.slane %v359_v46, %v2392_v41 }
  0x93   : > { %v580_v4 = vsel %vm3316_vm12, %v497_v5, %v569_v50  ;;  %vm3317_vm9 = vmmov %vm3316_vm12  ;;  %v409_v49 = vpop.permute.xlu1 %408  ;;  %v406_v45 = vpop.permute.xlu0 %405  ;;  %v391_v44 = vrot.slane %v387_v48, %v2395_v42  ;;  %v395_v58 = vrot.slane %v387_v48, %v2392_v41  ;;  %vm2614_vm11 = vcmp.eq.s32.totalorder %v419_v3, 1 }
  0x94   : > { %v579_v47 = vsel %vm3317_vm9, %v496_v60, %v568_v1  ;;  %642 = vmatprep.subr.mxu0 %v580_v4  ;;  %vm2618_vm4 = vcmp.eq.s32.totalorder %v423_v16, 1  ;;  %v411_v62 = vsel %vm410_vm6, %v409_v49, %v406_v45  ;;  %v414_v1 = vsel %vm410_vm6, %v406_v45, %v409_v49  ;;  %vm3332_vm7 = vmmov %vm3317_vm9 }
  0x95   : > { %643 = vmatpush1.msra.mxu0 %v579_v47  ;;  %vm354_vm10 = vcmask 130048   ;;  %v332_v51 = vsel %vm319_vm5, 1, %v3314_v63  ;;  %vm2623_vm1 = vcmp.eq.s32.totalorder %v363_v53, 1  ;;  %vm2627_vm13 = vcmp.eq.s32.totalorder %v367_v40, 1  ;;  %vm3333_vm12 = vmmov %vm3332_vm7 }
  0x96   : > { %644 = vmatprep.subr.mxu0 %v578_v54  ;;  %vm382_vm0 = vcmask 121856   ;;  %v426_v57 = vsel %vm2614_vm11, %v414_v1, 0.0  ;;  %v427_v54 = vsel %vm2618_vm4, %v411_v62, 0.0  ;;  %vm2635_vm3 = vcmp.eq.s32.totalorder %v391_v44, 1  ;;  %vm3334_vm9 = vmmov %vm3332_vm7 }
  0x97   : > { %645 = vmatpush1.msra.mxu0 %v577_v43  ;;  %v353_v50 = vpop.permute.xlu1 %352  ;;  %v350_v61 = vpop.permute.xlu0 %349  ;;  %vm2639_vm2 = vcmp.eq.s32.totalorder %v395_v58, 1  ;;  %v336_v63 = vrot.slane %v332_v51, %v2395_v42  ;;  %v340_v46 = vrot.slane %v332_v51, %v2392_v41  ;;  %vm327_vm14 = vcmask 138240   ;;  %vm3335_vm6 = vmmov %vm3332_vm7 }
  0x98   : > { %v355_v5 = vsel %vm354_vm10, %v353_v50, %v350_v61  ;;  %v358_v3 = vsel %vm354_vm10, %v350_v61, %v353_v50  ;;  %v556_v47 = vrot.slane %v426_v57, 4  ;;  %v557_v48 = vrot.slane %v427_v54, 4 }
  0x99   : > { %v370_v53 = vsel %vm2623_vm1, %v358_v3, 0.0  ;;  %v371_v40 = vsel %vm2627_vm13, %v355_v5, 0.0  ;;  %vm2653_vm15 = vcmp.eq.s32.totalorder %v336_v63, 1  ;;  %vm342_vm8 = vcmp.eq.s32.totalorder %v340_v46, 1  ;;  %v581_v5 = vld [vmem:[%s3265_s3] sm:$0xff]  ;;  %v582_v63 = vld [vmem:[%s3265_s3 + $0x8] sm:$0xff] }
  0x9a   : > { %v550_v61 = vrot.slane %v370_v53, 4  ;;  %v551_v51 = vrot.slane %v371_v40, 4  ;;  %vm602_vm5 = vcmask 293888   ;;  %v3336_v3 = vmov 0.0   ;;  %v583_v46 = vld [vmem:[%s3265_s3 + $0x10] sm:$0x3] }
  0x9b   : > { %v381_v4 = vpop.permute.xlu1 %380  ;;  %v378_v16 = vpop.permute.xlu0 %377 }
  0x9c   : > { %v383_v49 = vsel %vm382_vm0, %v381_v4, %v378_v16  ;;  %v386_v45 = vsel %vm382_vm0, %v378_v16, %v381_v4 }
  0x9d   : > { %v398_v44 = vsel %vm2635_vm3, %v386_v45, 0.0  ;;  %v399_v58 = vsel %vm2639_vm2, %v383_v49, 0.0 }
  0x9e   : > { %v576_v52 = vsel %vm3332_vm7, %v399_v58, %v557_v48  ;;  %v575_v62 = vsel %vm3333_vm12, %v398_v44, %v556_v47 }
  0x9f   : > { %v326_v1 = vpop.permute.xlu1 %325  ;;  %v323_v50 = vpop.permute.xlu0 %322  ;;  %646 = vmatprep.subr.mxu0 %v576_v52 }
  0xa0   : > { %v328_v59 = vsel %vm327_vm14, %v326_v1, %v323_v50  ;;  %v331_v56 = vsel %vm327_vm14, %v323_v50, %v326_v1  ;;  %647 = vmatpush1.msra.mxu0 %v575_v62 }
  0xa1   : > { %v343_v57 = vsel %vm2653_vm15, %v331_v56, 0.0  ;;  %v344_v54 = vsel %vm342_vm8, %v328_v59, 0.0 }
  0xa2   : > { %v574_v43 = vsel %vm3334_vm9, %v344_v54, %v551_v51  ;;  %v573_v60 = vsel %vm3335_vm6, %v343_v57, %v550_v61  ;;  %v2187_v57 = vmov 1966171168  }
  0xa3   : > { %648 = vmatprep.subr.mxu0 %v574_v43  ;;  %v827_v54 = vunpack.c.l.s4 %v2187_v57 }
  0xa4   : > { %649 = vmatpush1.msra.mxu0 %v573_v60 }
  0xa5   : > { %2066 = vmatmul.mubr.msk.f32.vlgmr.msra.gmra.mxu0 %vm602_vm5, %v581_v5  ;;  %v828_v60 = vunpack.c.0.s8 %v827_v54 }
  0xa6   : > { %688 = vmatprep.mubr.f32.mxu0 %v3336_v3 }
  0xa9   : > { %2067 = vmatmul.mubr.msk.f32.gmra.mxu0 %vm602_vm5, %v582_v63 }
  0xaa   : > { %694 = vmatprep.mubr.f32.mxu0 %v3336_v3 }
  0xac   : > { %v590_v43 = vpop.permute.xlu0 %589 }
  0xad   : > { %2068 = vmatmul.mubr.msk.f32.gmra.mxu0 %vm602_vm5, %v583_v46 }
  0xd6   : > { %v792_v4 = vpop.f32.mrf.mxu1 }
  0xd8   : > { %v794_v16 = vpop.f32.mrf.mxu1 }
  0xd9   : > { %v858_v47 = vcombine.low %v792_v4, %v794_v16  ;;  %v889_v48 = vcombine.high %v792_v4, %v794_v16  ;;  %v2677_v4 = vsub.s32 %v828_v60, %v2256_v6 }
  0xda   : > { %v798_v49 = vpop.f32.mrf.mxu1 }
  0xdb   : > { %860 = vst [vmem:[#allocation4] sm:$0xff] %v858_v47  ;;  %892 = vst [vmem:[#allocation4 + $0x8] sm:$0xff] %v889_v48 }
  0xdc   : > { %v800_v45 = vpop.f32.mrf.mxu1 }
  0xdd   : > { %v936_v53 = vcombine.low %v798_v49, %v800_v45  ;;  %v971_v40 = vcombine.high %v798_v49, %v800_v45  ;;  %v595_v49 = vpop.permute.xlu1 %594 }
  0xde   : > { %v804_v44 = vpop.f32.mrf.mxu1 }
  0xdf   : > { %939 = vst [vmem:[#allocation4 + $0x10] sm:$0xff] %v936_v53  ;;  %974 = vst [vmem:[#allocation4 + $0x18] sm:$0xff] %v971_v40 }
  0xe0   : > { %v806_v58 = vpop.f32.mrf.mxu1 }
  0xe1   : > { %v1010_v55 = vcombine.low %v804_v44, %v806_v58  ;;  %v1042_v52 = vcombine.high %v804_v44, %v806_v58  ;;  %v3337_v58 = vlaneseq }
  0xe2   : > { %v810_v62 = vpop.f32.mrf.mxu1 }
  0xe3   : > { %1013 = vst [vmem:[#allocation4 + $0x20] sm:$0xff] %v1010_v55  ;;  %1045 = vst [vmem:[#allocation4 + $0x28] sm:$0xff] %v1042_v52  ;;  %vm2680_vm11 = vcmp.lt.s32.totalorder %v3337_v58, 256 }
  0xe4   : > { %v812_v1 = vpop.f32.mrf.mxu1 }
  0xe5   : > { %v1089_v50 = vcombine.low %v810_v62, %v812_v1  ;;  %v1117_v61 = vcombine.high %v810_v62, %v812_v1 }
  0xe6   : > { %v816_v51 = vpop.f32.mrf.mxu1 }
  0xe7   : > { %1092 = vst [vmem:[#allocation4 + $0x30] sm:$0xff] %v1089_v50  ;;  %1120 = vst [vmem:[#allocation4 + $0x38] sm:$0xff] %v1117_v61 }
  0xe8   : > { %v818_v59 = vpop.f32.mrf.mxu1 }
  0xe9   : > { %v1156_v56 = vcombine.low %v816_v51, %v818_v59 }
  0xeb   : > { %1159 = vst [vmem:[#allocation4 + $0x40] sm:$0xff] %v1156_v56 }
 0x165   : > { %v684_v5 = vpop.f32.mrf.mxu0 }
 0x166   : > { %v685_v3 = vadd.f32 %v684_v5, %v590_v43 }
 0x167   : > { %v686_v63 = vpop.f32.mrf.mxu0 }
 0x168   : > { %v687_v46 = vadd.f32 %v686_v63, %v590_v43  ;;  %v821_v16 = vadd.f32 -1.0, %v685_v3  ;;  %v911_v47 = vadd.f32 1.0, %v685_v3 }
 0x169   : > { %v690_v48 = vpop.f32.mrf.mxu0 }
 0x16a   : > { %v822_v45 = vadd.f32 -1.0, %v687_v46  ;;  %v869_v53 = vcombine.low %v685_v3, %v687_v46  ;;  %v912_v40 = vadd.f32 1.0, %v687_v46  ;;  %v940_v44 = vcombine.high %v685_v3, %v687_v46 }
 0x16b   : > { %v691_v52 = vadd.f32 %v690_v48, %v595_v49  ;;  %v692_v62 = vpop.f32.mrf.mxu0 }
 0x16c   : > { %v825_v1 = vcombine.low %v821_v16, %v822_v45  ;;  %v876_v50 = vrot.slane %v869_v53, %v2677_v4  ;;  %v893_v61 = vcombine.high %v821_v16, %v822_v45  ;;  %v915_v51 = vcombine.high %v911_v47, %v912_v40 }
 0x16d   : > { %v947_v59 = vrot.slane %v940_v44, %v2677_v4  ;;  %v1018_v56 = vadd.f32 1.0, %v691_v52  ;;  %v1064_v57 = vadd.f32 -1.0, %v691_v52  ;;  %v693_v54 = vadd.f32 %v692_v62, %v595_v49  ;;  %v696_v49 = vpop.f32.mrf.mxu0 }
 0x16e   : > { %v832_v43 = vrot.slane %v825_v1, %v2677_v4  ;;  %v877_v60 = vcombine.high %v876_v50, %v876_v50  ;;  %v900_v5 = vrot.slane %v893_v61, %v2677_v4  ;;  %v922_v3 = vrot.slane %v915_v51, %v2677_v4 }
 0x16f   : > { %v954_v63 = vrot.slane %v947_v59, %v2677_v4  ;;  %v979_v46 = vcombine.low %v691_v52, %v693_v54  ;;  %v1019_v48 = vadd.f32 1.0, %v693_v54  ;;  %v1065_v58 = vadd.f32 -1.0, %v693_v54 }
 0x170   : > { %v839_v16 = vrot.slane %v832_v43, %v2677_v4  ;;  %v846_v47 = vcombine.high %v832_v43, %v832_v43  ;;  %v884_v45 = vrot.slane %v877_v60, %v2677_v4  ;;  %v907_v53 = vrot.slane %v900_v5, %v2677_v4 }
 0x171   : > { %v923_v40 = vcombine.high %v922_v3, %v922_v3  ;;  %v955_v44 = vcombine.high %v954_v63, %v954_v63  ;;  %v959_v62 = vcombine.high %v900_v5, %v900_v5  ;;  %v986_v1 = vrot.slane %v979_v46, %v2677_v4  ;;  %v600_v63 = vpop.permute.xlu1 %599 }
 0x172   : > { %845 = vst.msk [vmem:[#allocation2] sm:$0x3] %vm2680_vm11, %v839_v16  ;;  %v853_v50 = vrot.slane %v846_v47, %v2677_v4  ;;  %v861_v61 = vcombine.high %v839_v16, %v839_v16  ;;  %v885_v51 = vcombine.high %v884_v45, %v884_v45  ;;  %910 = vst.msk [vmem:[#allocation2 + $0x4] sm:$0x3] %vm2680_vm11, %v907_v53  ;;  %v698_v53 = vpop.f32.mrf.mxu0 }
 0x173   : > { %v1022_v59 = vcombine.low %v1018_v56, %v1019_v48  ;;  %v930_v43 = vrot.slane %v923_v40, %v2677_v4  ;;  %958 = vst.msk [vmem:[#allocation2 + $0x6] sm:$0x3] %vm2680_vm11, %v955_v44  ;;  %v966_v60 = vrot.slane %v959_v62, %v2677_v4  ;;  %v993_v5 = vrot.slane %v986_v1, %v2677_v4 }
 0x174   : > { %v997_v3 = vcombine.high %v986_v1, %v986_v1  ;;  %855 = vst.msk [vmem:[#allocation3] sm:$0x3] %vm2680_vm11, %v853_v50  ;;  %864 = vst.msk [vmem:[#allocation2 + $0x2] sm:$0x3] %vm2680_vm11, %v861_v61  ;;  %v1046_v16 = vcombine.high %v1018_v56, %v1019_v48  ;;  %v1068_v47 = vcombine.high %v1064_v57, %v1065_v58 }
 0x175   : > { %888 = vst.msk [vmem:[#allocation3 + $0x2] sm:$0x3] %vm2680_vm11, %v885_v51  ;;  %v1029_v46 = vrot.slane %v1022_v59, %v2677_v4  ;;  %v1097_v45 = vcombine.high %v691_v52, %v693_v54  ;;  %933 = vst.msk [vmem:[#allocation3 + $0x4] sm:$0x3] %vm2680_vm11, %v930_v43  ;;  %v967_v40 = vcombine.high %v966_v60, %v966_v60 }
 0x176   : > { %996 = vst.msk [vmem:[#allocation2 + $0x8] sm:$0x3] %vm2680_vm11, %v993_v5  ;;  %v1004_v44 = vrot.slane %v997_v3, %v2677_v4  ;;  %v1014_v62 = vcombine.high %v993_v5, %v993_v5  ;;  %v697_v1 = vadd.f32 %v696_v49, %v600_v63  ;;  %v1053_v61 = vrot.slane %v1046_v16, %v2677_v4 }
 0x177   : > { %v1030_v50 = vcombine.high %v1029_v46, %v1029_v46  ;;  %v1075_v51 = vrot.slane %v1068_v47, %v2677_v4  ;;  %v1104_v56 = vrot.slane %v1097_v45, %v2677_v4  ;;  %970 = vst.msk [vmem:[#allocation3 + $0x6] sm:$0x3] %vm2680_vm11, %v967_v40  ;;  %v699_v52 = vadd.f32 %v698_v53, %v600_v63 }
 0x178   : > { %1007 = vst.msk [vmem:[#allocation3 + $0x8] sm:$0x3] %vm2680_vm11, %v1004_v44  ;;  %1017 = vst.msk [vmem:[#allocation2 + $0xa] sm:$0x3] %vm2680_vm11, %v1014_v62  ;;  %v1060_v54 = vrot.slane %v1053_v61, %v2677_v4  ;;  %v1121_v49 = vadd.f32 1.0, %v697_v1  ;;  %v2746_v40 = vmov 0.0  }
 0x179   : > { %v1037_v57 = vrot.slane %v1030_v50, %v2677_v4  ;;  %v1076_v48 = vcombine.high %v1075_v51, %v1075_v51  ;;  %v1105_v58 = vcombine.high %v1104_v56, %v1104_v56  ;;  %v1122_v59 = vadd.f32 1.0, %v699_v52 }
 0x17a   : > { %1063 = vst.msk [vmem:[#allocation2 + $0xc] sm:$0x3] %vm2680_vm11, %v1060_v54  ;;  %v1093_v5 = vcombine.high %v1060_v54, %v1060_v54  ;;  %v2748_v44 = vmov 0.0  }
 0x17b   : > { %v1038_v43 = vcombine.high %v1037_v57, %v1037_v57  ;;  %v1083_v60 = vrot.slane %v1076_v48, %v2677_v4  ;;  %v1112_v3 = vrot.slane %v1105_v58, %v2677_v4  ;;  %v1125_v46 = vcombine.low %v1121_v49, %v1122_v59 }
 0x17c   : > { %1096 = vst.msk [vmem:[#allocation2 + $0xe] sm:$0x3] %vm2680_vm11, %v1093_v5 }
 0x17d   : > { %1041 = vst.msk [vmem:[#allocation3 + $0xa] sm:$0x3] %vm2680_vm11, %v1038_v43  ;;  %1086 = vst.msk [vmem:[#allocation3 + $0xc] sm:$0x3] %vm2680_vm11, %v1083_v60  ;;  %v1113_v63 = vcombine.high %v1112_v3, %v1112_v3  ;;  %v1132_v16 = vrot.slane %v1125_v46, %v2677_v4 }
 0x17f   : > { %1116 = vst.msk [vmem:[#allocation3 + $0xe] sm:$0x3] %vm2680_vm11, %v1113_v63  ;;  %v1139_v47 = vrot.slane %v1132_v16, %v2677_v4  ;;  %v1143_v45 = vcombine.high %v1132_v16, %v1132_v16 }
 0x181   : > { %1142 = vst.msk [vmem:[#allocation2 + $0x10] sm:$0x3] %vm2680_vm11, %v1139_v47  ;;  %v1150_v53 = vrot.slane %v1143_v45, %v2677_v4 }
 0x183   : > { %1153 = vst.msk [vmem:[#allocation3 + $0x10] sm:$0x3] %vm2680_vm11, %v1150_v53 }
 0x184 LB: >> { %s2076_s30 = sshll.u32 %s2175_s29, 1  ;;  %v3340_v0 = vld [vmem:[#allocation5_spill] sm:$0xff]  ;;  %v3342_v50 = vcvt.s32.f32 %v2249_v2  ;;  %s2084_s11 = sshll.u32 %s2175_s29, 3  ;;  %s2175_s29 = sphi %s2750_s29, %s1198_s29   ;;  %v2171_v44 = vphi %v2748_v44, %v3350_v44   ;;  %v2167_v40 = vphi %v2746_v40, %v3349_v40  }
 0x185   : >> { %s1202_s9 = scalar_lea.vmem [#allocation2], %s2076_s30  ;;  %s1205_s10 = scalar_lea.vmem [#allocation3], %s2076_s30  ;;  %v3341_v62 = vcvt.s32.f32 %v3340_v0 }
 0x186   : >> { %s1871_s12 = scalar_lea.vmem [#allocation4], %s2084_s11  ;;  %s1198_s29 = sadd.s32 1, %s2175_s29  }
 0x187   : >> { %p1195_p4 = scmp.ge.s32.totalorder %s1198_s29, 9  }
 0x188   : >> { %v1203_v4 = vld [vmem:[%s1202_s9] sm:$0x3] }
 0x189   : >> { %v1204_v1 = vadd.f32 %v1203_v4, %v3341_v62 }
 0x18a   : >> { %v1206_v55 = vld [vmem:[%s1205_s10] sm:$0x3] }
 0x18b   : >> { %v1207_v61 = vadd.f32 %v1206_v55, %v3342_v50  ;;  %v1208_v51 = vfloor.f32 %v1204_v1 }
 0x18d   : >> { %v1209_v56 = vfloor.f32 %v1207_v61  ;;  %v1210_v52 = vsub.f32 %v1204_v1, %v1208_v51  ;;  %v2085_v54 = vtrunc.f32 %v1208_v51 }
 0x18f   : >> { %v1211_v57 = vsub.f32 %v1207_v61, %v1209_v56  ;;  %v2087_v48 = vtrunc.f32 %v1209_v56  ;;  %v2086_v58 = vcvt.f32.s32 %v2085_v54  ;;  %v1227_v59 = vsub.f32 1.0, %v1210_v52 }
 0x191   : >> { %v2088_v49 = vcvt.f32.s32 %v2087_v48  ;;  %v1228_v43 = vsub.f32 1.0, %v1211_v57  ;;  %vm1214_vm4 = vcmp.ge.s32.totalorder %v2086_v58, 0  ;;  %vm1215_vm10 = vcmp.lt.s32.totalorder %v2086_v58, 16 }
 0x192   : >> { %vm1217_vm1 = vcmp.ge.s32.totalorder %v2086_v58, 4294967295  ;;  %vm1218_vm13 = vcmp.lt.s32.totalorder %v2086_v58, 15  ;;  %vm2766_vm0 = vmand %vm1214_vm4, %vm1215_vm10  ;;  %v1240_v46 = vmul.u32 16, %v2086_v58  ;;  %v1232_v63 = vmul.f32 %v1227_v59, %v1211_v57 }
 0x193   : >> { %vm1220_vm3 = vcmp.ge.s32.totalorder %v2088_v49, 0  ;;  %vm1221_vm2 = vcmp.lt.s32.totalorder %v2088_v49, 16  ;;  %vm1223_vm14 = vcmp.ge.s32.totalorder %v2088_v49, 4294967295  ;;  %vm1224_vm15 = vcmp.lt.s32.totalorder %v2088_v49, 15  ;;  %vm2770_vm8 = vmand %vm1217_vm1, %vm1218_vm13 }
 0x194   : >> { %v1229_v3 = vmul.f32 %v1228_v43, %v1227_v59  ;;  %vm1222_vm7 = vmand %vm1220_vm3, %vm1221_vm2  ;;  %v1235_v47 = vmul.f32 %v1228_v43, %v1210_v52  ;;  %v1241_v45 = vadd.s32 %v2088_v49, %v1240_v46  ;;  %v1238_v53 = vmul.f32 %v1211_v57, %v1210_v52 }
 0x195   : >> { %vm2774_vm12 = vmand %vm1223_vm14, %vm1224_vm15 }
 0x196   : >> { %vm1226_vm9 = vmand %vm2766_vm0, %vm1222_vm7  ;;  %v2785_v55 = vrot.slane %v1241_v45, %v2392_v41  ;;  %v2788_v62 = vrot.slane %v1241_v45, %v2395_v42 }
 0x197   : >> { %v1230_v4 = vsel %vm1226_vm9, %v1229_v3, 0.0  ;;  %vm1231_vm6 = vmand %vm2766_vm0, %vm2774_vm12 }
 0x198   : >> { %v1233_v1 = vsel %vm1231_vm6, %v1232_v63, 0.0  ;;  %vm1234_vm5 = vmand %vm2770_vm8, %vm1222_vm7  ;;  %v2793_v50 = vrot.slane %v1230_v4, %v2392_v41  ;;  %v1281_v51 = vsub.s32 %v2318_v23, %v2785_v55  ;;  %v1280_v56 = vsub.s32 %v2318_v23, %v2788_v62 }
 0x199   : >> { %v1236_v61 = vsel %vm1234_vm5, %v1235_v47, 0.0  ;;  %vm1237_vm11 = vmand %vm2770_vm8, %vm2774_vm12  ;;  %v2804_v52 = vrot.slane %v1230_v4, %v2395_v42  ;;  %v2810_v48 = vrot.slane %v1233_v1, %v2392_v41  ;;  %v2816_v49 = vrot.slane %v1233_v1, %v2395_v42 }
 0x19a   : >> { %v1239_v57 = vsel %vm1237_vm11, %v1238_v53, 0.0  ;;  %v2807_v54 = vrot.slane %v1236_v61, %v2392_v41  ;;  %v2813_v58 = vrot.slane %v1236_v61, %v2395_v42  ;;  %vm1345_vm4 = vcmp.eq.s32.totalorder %v1281_v51, 0 }
 0x19b   : >> { %vm1409_vm10 = vcmp.eq.s32.totalorder %v1281_v51, 1  ;;  %vm1537_vm1 = vcmp.eq.s32.totalorder %v1281_v51, 17  ;;  %vm1473_vm13 = vcmp.eq.s32.totalorder %v1281_v51, 16  ;;  %v2819_v59 = vrot.slane %v1239_v57, %v2392_v41 }
 0x19c   : >> { %vm1344_vm0 = vcmp.eq.s32.totalorder %v1280_v56, 0  ;;  %vm1408_vm3 = vcmp.eq.s32.totalorder %v1280_v56, 1  ;;  %vm1472_vm2 = vcmp.eq.s32.totalorder %v1280_v56, 16  ;;  %vm1536_vm14 = vcmp.eq.s32.totalorder %v1280_v56, 17 }
 0x19d   : >> { %v2822_v43 = vrot.slane %v1239_v57, %v2395_v42  ;;  %v1279_v60 = vsub.s32 %v2315_v22, %v2785_v55  ;;  %v1612_v5 = vsel %vm1537_vm1, %v2819_v59, 0.0  ;;  %v1278_v3 = vsub.s32 %v2315_v22, %v2788_v62 }
 0x19e   : >> { %v1277_v46 = vsub.s32 %v2312_v21, %v2785_v55  ;;  %v1276_v63 = vsub.s32 %v2312_v21, %v2788_v62  ;;  %v1687_v16 = vsel %vm1473_vm13, %v2807_v54, %v1612_v5  ;;  %v1275_v45 = vsub.s32 %v2309_v20, %v2785_v55 }
 0x19f   : >> { %v1611_v47 = vsel %vm1536_vm14, %v2822_v43, 0.0  ;;  %vm1407_vm15 = vcmp.eq.s32.totalorder %v1279_v60, 1  ;;  %v1762_v53 = vsel %vm1409_vm10, %v2810_v48, %v1687_v16  ;;  %vm1471_vm8 = vcmp.eq.s32.totalorder %v1279_v60, 16 }
 0x1a0   : >> { %v1686_v4 = vsel %vm1472_vm2, %v2813_v58, %v1611_v47  ;;  %vm1535_vm7 = vcmp.eq.s32.totalorder %v1279_v60, 17  ;;  %v1837_v1 = vsel %vm1345_vm4, %v2793_v50, %v1762_v53  ;;  %vm1343_vm12 = vcmp.eq.s32.totalorder %v1279_v60, 0 }
 0x1a1   : >> { %v1761_v61 = vsel %vm1408_vm3, %v2816_v49, %v1686_v4  ;;  %v1610_v57 = vsel %vm1535_vm7, %v2819_v59, 0.0  ;;  %1876 = vmatprep.subr.mxu0 %v1837_v1  ;;  %vm1342_vm9 = vcmp.eq.s32.totalorder %v1278_v3, 0  ;;  %vm1470_vm6 = vcmp.eq.s32.totalorder %v1278_v3, 16 }
 0x1a2   : >> { %v1836_v5 = vsel %vm1344_vm0, %v2804_v52, %v1761_v61  ;;  %v1685_v0 = vsel %vm1471_vm8, %v2807_v54, %v1610_v57  ;;  %vm1406_vm5 = vcmp.eq.s32.totalorder %v1278_v3, 1  ;;  %vm1534_vm11 = vcmp.eq.s32.totalorder %v1278_v3, 17 }
 0x1a3   : >> { %1877 = vmatpush1.msra.mxu0 %v1836_v5  ;;  %v1760_v16 = vsel %vm1407_vm15, %v2810_v48, %v1685_v0  ;;  %vm1405_vm4 = vcmp.eq.s32.totalorder %v1277_v46, 1  ;;  %v1609_v47 = vsel %vm1534_vm11, %v2822_v43, 0.0  ;;  %vm1469_vm10 = vcmp.eq.s32.totalorder %v1277_v46, 16 }
 0x1a4   : >> { %v1835_v51 = vsel %vm1343_vm12, %v2793_v50, %v1760_v16  ;;  %vm1533_vm1 = vcmp.eq.s32.totalorder %v1277_v46, 17  ;;  %v1684_v56 = vsel %vm1470_vm6, %v2813_v58, %v1609_v47  ;;  %vm1341_vm13 = vcmp.eq.s32.totalorder %v1277_v46, 0 }
 0x1a5   : >> { %1878 = vmatprep.subr.mxu0 %v1835_v51  ;;  %v1608_v53 = vsel %vm1533_vm1, %v2819_v59, 0.0  ;;  %vm1404_vm0 = vcmp.eq.s32.totalorder %v1276_v63, 1  ;;  %v1759_v4 = vsel %vm1406_vm5, %v2816_v49, %v1684_v56  ;;  %vm1468_vm3 = vcmp.eq.s32.totalorder %v1276_v63, 16 }
 0x1a6   : >> { %v1683_v0 = vsel %vm1469_vm10, %v2807_v54, %v1608_v53  ;;  %vm1532_vm2 = vcmp.eq.s32.totalorder %v1276_v63, 17  ;;  %v1834_v60 = vsel %vm1342_vm9, %v2804_v52, %v1759_v4  ;;  %vm1340_vm14 = vcmp.eq.s32.totalorder %v1276_v63, 0 }
 0x1a7   : >> { %v1758_v1 = vsel %vm1405_vm4, %v2810_v48, %v1683_v0  ;;  %v1607_v61 = vsel %vm1532_vm2, %v2822_v43, 0.0  ;;  %1879 = vmatpush1.msra.mxu0 %v1834_v60  ;;  %vm1403_vm15 = vcmp.eq.s32.totalorder %v1275_v45, 1  ;;  %vm1467_vm8 = vcmp.eq.s32.totalorder %v1275_v45, 16 }
 0x1a8   : >> { %v1833_v46 = vsel %vm1341_vm13, %v2793_v50, %v1758_v1  ;;  %v1682_v57 = vsel %vm1468_vm3, %v2813_v58, %v1607_v61  ;;  %vm1531_vm7 = vcmp.eq.s32.totalorder %v1275_v45, 17  ;;  %v1274_v3 = vsub.s32 %v2309_v20, %v2788_v62 }
 0x1a9   : >> { %1880 = vmatprep.subr.mxu0 %v1833_v46  ;;  %v1757_v5 = vsel %vm1404_vm0, %v2816_v49, %v1682_v57  ;;  %v1273_v16 = vsub.s32 %v2306_v19, %v2785_v55  ;;  %vm1339_vm12 = vcmp.eq.s32.totalorder %v1275_v45, 0  ;;  %v1606_v51 = vsel %vm1531_vm7, %v2819_v59, 0.0 }
 0x1aa   : >> { %v1832_v63 = vsel %vm1340_vm14, %v2804_v52, %v1757_v5  ;;  %v1272_v47 = vsub.s32 %v2306_v19, %v2788_v62  ;;  %v1681_v56 = vsel %vm1467_vm8, %v2807_v54, %v1606_v51  ;;  %vm1338_vm9 = vcmp.eq.s32.totalorder %v1274_v3, 0 }
 0x1ab   : >> { %1881 = vmatpush1.msra.mxu0 %v1832_v63  ;;  %vm1466_vm6 = vcmp.eq.s32.totalorder %v1274_v3, 16  ;;  %v1271_v53 = vsub.s32 %v2303_v18, %v2785_v55  ;;  %v1756_v4 = vsel %vm1403_vm15, %v2810_v48, %v1681_v56  ;;  %vm1402_vm5 = vcmp.eq.s32.totalorder %v1274_v3, 1 }
 0x1ac   : >> { %vm1530_vm11 = vcmp.eq.s32.totalorder %v1274_v3, 17  ;;  %vm1401_vm4 = vcmp.eq.s32.totalorder %v1273_v16, 1  ;;  %v1831_v0 = vsel %vm1339_vm12, %v2793_v50, %v1756_v4  ;;  %vm1465_vm10 = vcmp.eq.s32.totalorder %v1273_v16, 16 }
 0x1ad   : >> { %v1605_v60 = vsel %vm1530_vm11, %v2822_v43, 0.0  ;;  %vm1529_vm1 = vcmp.eq.s32.totalorder %v1273_v16, 17  ;;  %1882 = vmatprep.subr.mxu0 %v1831_v0  ;;  %vm1337_vm13 = vcmp.eq.s32.totalorder %v1273_v16, 0  ;;  %vm1400_vm0 = vcmp.eq.s32.totalorder %v1272_v47, 1 }
 0x1ae   : >> { %v1680_v1 = vsel %vm1466_vm6, %v2813_v58, %v1605_v60  ;;  %v1604_v61 = vsel %vm1529_vm1, %v2819_v59, 0.0  ;;  %vm1464_vm3 = vcmp.eq.s32.totalorder %v1272_v47, 16  ;;  %vm1528_vm2 = vcmp.eq.s32.totalorder %v1272_v47, 17 }
 0x1af   : >> { %v1755_v46 = vsel %vm1402_vm5, %v2816_v49, %v1680_v1  ;;  %v1679_v45 = vsel %vm1465_vm10, %v2807_v54, %v1604_v61  ;;  %vm1336_vm14 = vcmp.eq.s32.totalorder %v1272_v47, 0  ;;  %v1603_v63 = vsel %vm1528_vm2, %v2822_v43, 0.0 }
 0x1b0   : >> { %v1830_v57 = vsel %vm1338_vm9, %v2804_v52, %v1755_v46  ;;  %v1754_v5 = vsel %vm1401_vm4, %v2810_v48, %v1679_v45  ;;  %v1678_v51 = vsel %vm1464_vm3, %v2813_v58, %v1603_v63  ;;  %vm1399_vm15 = vcmp.eq.s32.totalorder %v1271_v53, 1 }
 0x1b1   : >> { %1883 = vmatpush1.msra.mxu0 %v1830_v57  ;;  %v1829_v16 = vsel %vm1337_vm13, %v2793_v50, %v1754_v5  ;;  %vm1463_vm8 = vcmp.eq.s32.totalorder %v1271_v53, 16  ;;  %v1753_v56 = vsel %vm1400_vm0, %v2816_v49, %v1678_v51  ;;  %vm1527_vm7 = vcmp.eq.s32.totalorder %v1271_v53, 17 }
 0x1b2   : >> { %1884 = vmatprep.subr.mxu0 %v1829_v16  ;;  %v1270_v3 = vsub.s32 %v2303_v18, %v2788_v62  ;;  %v1269_v4 = vsub.s32 %v2300_v17, %v2785_v55  ;;  %v1828_v47 = vsel %vm1336_vm14, %v2804_v52, %v1753_v56  ;;  %vm1335_vm12 = vcmp.eq.s32.totalorder %v1271_v53, 0 }
 0x1b3   : >> { %v1602_v0 = vsel %vm1527_vm7, %v2819_v59, 0.0  ;;  %v1268_v60 = vsub.s32 %v2300_v17, %v2788_v62  ;;  %1885 = vmatpush1.msra.mxu0 %v1828_v47  ;;  %v1267_v61 = vsub.s32 %v2290_v15, %v2785_v55 }
 0x1b4   : >> { %v1677_v1 = vsel %vm1463_vm8, %v2807_v54, %v1602_v0  ;;  %vm1334_vm9 = vcmp.eq.s32.totalorder %v1270_v3, 0  ;;  %vm1462_vm6 = vcmp.eq.s32.totalorder %v1270_v3, 16  ;;  %vm1398_vm5 = vcmp.eq.s32.totalorder %v1270_v3, 1 }
 0x1b5   : >> { %v1752_v46 = vsel %vm1399_vm15, %v2810_v48, %v1677_v1  ;;  %vm1526_vm11 = vcmp.eq.s32.totalorder %v1270_v3, 17  ;;  %vm1397_vm4 = vcmp.eq.s32.totalorder %v1269_v4, 1  ;;  %vm1461_vm10 = vcmp.eq.s32.totalorder %v1269_v4, 16 }
 0x1b6   : >> { %v1827_v45 = vsel %vm1335_vm12, %v2793_v50, %v1752_v46  ;;  %v1601_v57 = vsel %vm1526_vm11, %v2822_v43, 0.0  ;;  %vm1525_vm1 = vcmp.eq.s32.totalorder %v1269_v4, 17  ;;  %vm1333_vm13 = vcmp.eq.s32.totalorder %v1269_v4, 0 }
 0x1b7   : >> { %1886 = vmatprep.subr.mxu0 %v1827_v45  ;;  %v1676_v5 = vsel %vm1462_vm6, %v2813_v58, %v1601_v57  ;;  %v1600_v63 = vsel %vm1525_vm1, %v2819_v59, 0.0  ;;  %vm1396_vm0 = vcmp.eq.s32.totalorder %v1268_v60, 1  ;;  %vm1460_vm3 = vcmp.eq.s32.totalorder %v1268_v60, 16 }
 0x1b8   : >> { %v1751_v16 = vsel %vm1398_vm5, %v2816_v49, %v1676_v5  ;;  %v1675_v53 = vsel %vm1461_vm10, %v2807_v54, %v1600_v63  ;;  %vm1524_vm2 = vcmp.eq.s32.totalorder %v1268_v60, 17  ;;  %vm1332_vm14 = vcmp.eq.s32.totalorder %v1268_v60, 0 }
 0x1b9   : >> { %v1826_v51 = vsel %vm1334_vm9, %v2804_v52, %v1751_v16  ;;  %v1750_v56 = vsel %vm1397_vm4, %v2810_v48, %v1675_v53  ;;  %v1599_v47 = vsel %vm1524_vm2, %v2822_v43, 0.0  ;;  %vm1395_vm15 = vcmp.eq.s32.totalorder %v1267_v61, 1 }
 0x1ba   : >> { %1887 = vmatpush1.msra.mxu0 %v1826_v51  ;;  %v1825_v4 = vsel %vm1333_vm13, %v2793_v50, %v1750_v56  ;;  %v1674_v0 = vsel %vm1460_vm3, %v2813_v58, %v1599_v47  ;;  %vm1459_vm8 = vcmp.eq.s32.totalorder %v1267_v61, 16  ;;  %vm1523_vm7 = vcmp.eq.s32.totalorder %v1267_v61, 17 }
 0x1bb   : >> { %1888 = vmatprep.subr.mxu0 %v1825_v4  ;;  %v1749_v1 = vsel %vm1396_vm0, %v2816_v49, %v1674_v0  ;;  %v1266_v3 = vsub.s32 %v2290_v15, %v2788_v62  ;;  %v1265_v46 = vsub.s32 %v2287_v14, %v2785_v55  ;;  %vm1331_vm12 = vcmp.eq.s32.totalorder %v1267_v61, 0 }
 0x1bc   : >> { %v1824_v60 = vsel %vm1332_vm14, %v2804_v52, %v1749_v1  ;;  %v1598_v45 = vsel %vm1523_vm7, %v2819_v59, 0.0  ;;  %v1264_v57 = vsub.s32 %v2287_v14, %v2788_v62  ;;  %v1263_v63 = vsub.s32 %v2284_v13, %v2785_v55 }
 0x1bd   : >> { %1889 = vmatpush1.msra.mxu0 %v1824_v60  ;;  %v1673_v5 = vsel %vm1459_vm8, %v2807_v54, %v1598_v45  ;;  %vm1330_vm9 = vcmp.eq.s32.totalorder %v1266_v3, 0  ;;  %vm1458_vm6 = vcmp.eq.s32.totalorder %v1266_v3, 16  ;;  %vm1394_vm5 = vcmp.eq.s32.totalorder %v1266_v3, 1 }
 0x1be   : >> { %v1748_v16 = vsel %vm1395_vm15, %v2810_v48, %v1673_v5  ;;  %vm1522_vm11 = vcmp.eq.s32.totalorder %v1266_v3, 17  ;;  %vm1393_vm4 = vcmp.eq.s32.totalorder %v1265_v46, 1  ;;  %vm1457_vm10 = vcmp.eq.s32.totalorder %v1265_v46, 16 }
 0x1bf   : >> { %v1823_v53 = vsel %vm1331_vm12, %v2793_v50, %v1748_v16  ;;  %v1597_v51 = vsel %vm1522_vm11, %v2822_v43, 0.0  ;;  %vm1521_vm1 = vcmp.eq.s32.totalorder %v1265_v46, 17  ;;  %vm1329_vm13 = vcmp.eq.s32.totalorder %v1265_v46, 0 }
 0x1c0   : >> { %1890 = vmatprep.subr.mxu0 %v1823_v53  ;;  %v1672_v56 = vsel %vm1458_vm6, %v2813_v58, %v1597_v51  ;;  %v1596_v47 = vsel %vm1521_vm1, %v2819_v59, 0.0  ;;  %vm1392_vm0 = vcmp.eq.s32.totalorder %v1264_v57, 1  ;;  %vm1456_vm3 = vcmp.eq.s32.totalorder %v1264_v57, 16 }
 0x1c1   : >> { %v1747_v4 = vsel %vm1394_vm5, %v2816_v49, %v1672_v56  ;;  %v1671_v61 = vsel %vm1457_vm10, %v2807_v54, %v1596_v47  ;;  %vm1520_vm2 = vcmp.eq.s32.totalorder %v1264_v57, 17  ;;  %vm1328_vm14 = vcmp.eq.s32.totalorder %v1264_v57, 0 }
 0x1c2   : >> { %v1822_v0 = vsel %vm1330_vm9, %v2804_v52, %v1747_v4  ;;  %v1746_v1 = vsel %vm1393_vm4, %v2810_v48, %v1671_v61  ;;  %v1595_v60 = vsel %vm1520_vm2, %v2822_v43, 0.0  ;;  %vm1391_vm15 = vcmp.eq.s32.totalorder %v1263_v63, 1 }
 0x1c3   : >> { %1891 = vmatpush1.msra.mxu0 %v1822_v0  ;;  %v1821_v46 = vsel %vm1329_vm13, %v2793_v50, %v1746_v1  ;;  %v1670_v45 = vsel %vm1456_vm3, %v2813_v58, %v1595_v60  ;;  %vm1455_vm8 = vcmp.eq.s32.totalorder %v1263_v63, 16  ;;  %vm1519_vm7 = vcmp.eq.s32.totalorder %v1263_v63, 17 }
 0x1c4   : >> { %1892 = vmatprep.subr.mxu0 %v1821_v46  ;;  %v1745_v5 = vsel %vm1392_vm0, %v2816_v49, %v1670_v45  ;;  %v1262_v3 = vsub.s32 %v2284_v13, %v2788_v62  ;;  %v1261_v16 = vsub.s32 %v2279_v11, %v2785_v55  ;;  %vm1327_vm12 = vcmp.eq.s32.totalorder %v1263_v63, 0 }
 0x1c5   : >> { %v1820_v57 = vsel %vm1328_vm14, %v2804_v52, %v1745_v5  ;;  %v1594_v53 = vsel %vm1519_vm7, %v2819_v59, 0.0  ;;  %v1260_v51 = vsub.s32 %v2279_v11, %v2788_v62  ;;  %v1259_v47 = vsub.s32 %v2276_v10, %v2785_v55 }
 0x1c6   : >> { %1893 = vmatpush1.msra.mxu0 %v1820_v57  ;;  %v1669_v56 = vsel %vm1455_vm8, %v2807_v54, %v1594_v53  ;;  %vm1326_vm9 = vcmp.eq.s32.totalorder %v1262_v3, 0  ;;  %vm1454_vm6 = vcmp.eq.s32.totalorder %v1262_v3, 16  ;;  %vm1390_vm5 = vcmp.eq.s32.totalorder %v1262_v3, 1 }
 0x1c7   : >> { %v1744_v4 = vsel %vm1391_vm15, %v2810_v48, %v1669_v56  ;;  %vm1518_vm11 = vcmp.eq.s32.totalorder %v1262_v3, 17  ;;  %vm1389_vm4 = vcmp.eq.s32.totalorder %v1261_v16, 1  ;;  %vm1453_vm10 = vcmp.eq.s32.totalorder %v1261_v16, 16 }
 0x1c8   : >> { %v1819_v61 = vsel %vm1327_vm12, %v2793_v50, %v1744_v4  ;;  %v1593_v0 = vsel %vm1518_vm11, %v2822_v43, 0.0  ;;  %vm1517_vm1 = vcmp.eq.s32.totalorder %v1261_v16, 17  ;;  %vm1325_vm13 = vcmp.eq.s32.totalorder %v1261_v16, 0 }
 0x1c9   : >> { %1894 = vmatprep.subr.mxu0 %v1819_v61  ;;  %v1668_v1 = vsel %vm1454_vm6, %v2813_v58, %v1593_v0  ;;  %v1592_v60 = vsel %vm1517_vm1, %v2819_v59, 0.0  ;;  %vm1388_vm0 = vcmp.eq.s32.totalorder %v1260_v51, 1  ;;  %vm1452_vm3 = vcmp.eq.s32.totalorder %v1260_v51, 16 }
 0x1ca   : >> { %v1743_v46 = vsel %vm1390_vm5, %v2816_v49, %v1668_v1  ;;  %v1667_v63 = vsel %vm1453_vm10, %v2807_v54, %v1592_v60  ;;  %vm1516_vm2 = vcmp.eq.s32.totalorder %v1260_v51, 17  ;;  %vm1324_vm14 = vcmp.eq.s32.totalorder %v1260_v51, 0 }
 0x1cb   : >> { %v1818_v45 = vsel %vm1326_vm9, %v2804_v52, %v1743_v46  ;;  %v1742_v5 = vsel %vm1389_vm4, %v2810_v48, %v1667_v63  ;;  %v1591_v57 = vsel %vm1516_vm2, %v2822_v43, 0.0  ;;  %vm1387_vm15 = vcmp.eq.s32.totalorder %v1259_v47, 1 }
 0x1cc   : >> { %1895 = vmatpush1.msra.mxu0 %v1818_v45  ;;  %v1817_v16 = vsel %vm1325_vm13, %v2793_v50, %v1742_v5  ;;  %v1666_v53 = vsel %vm1452_vm3, %v2813_v58, %v1591_v57  ;;  %vm1451_vm8 = vcmp.eq.s32.totalorder %v1259_v47, 16  ;;  %vm1515_vm7 = vcmp.eq.s32.totalorder %v1259_v47, 17 }
 0x1cd   : >> { %1896 = vmatprep.subr.mxu0 %v1817_v16  ;;  %v1741_v56 = vsel %vm1388_vm0, %v2816_v49, %v1666_v53  ;;  %v1258_v3 = vsub.s32 %v2276_v10, %v2788_v62  ;;  %v1257_v4 = vsub.s32 %v2273_v9, %v2785_v55  ;;  %vm1323_vm12 = vcmp.eq.s32.totalorder %v1259_v47, 0 }
 0x1ce   : >> { %v1816_v51 = vsel %vm1324_vm14, %v2804_v52, %v1741_v56  ;;  %v1590_v61 = vsel %vm1515_vm7, %v2819_v59, 0.0  ;;  %v1256_v0 = vsub.s32 %v2273_v9, %v2788_v62  ;;  %v1255_v60 = vsub.s32 %v2270_v8, %v2785_v55 }
 0x1cf   : >> { %1897 = vmatpush1.msra.mxu0 %v1816_v51  ;;  %v1665_v1 = vsel %vm1451_vm8, %v2807_v54, %v1590_v61  ;;  %vm1322_vm9 = vcmp.eq.s32.totalorder %v1258_v3, 0  ;;  %vm1450_vm6 = vcmp.eq.s32.totalorder %v1258_v3, 16  ;;  %vm1386_vm5 = vcmp.eq.s32.totalorder %v1258_v3, 1 }
 0x1d0   : >> { %v1740_v46 = vsel %vm1387_vm15, %v2810_v48, %v1665_v1  ;;  %vm1514_vm11 = vcmp.eq.s32.totalorder %v1258_v3, 17  ;;  %vm1385_vm4 = vcmp.eq.s32.totalorder %v1257_v4, 1  ;;  %vm1449_vm10 = vcmp.eq.s32.totalorder %v1257_v4, 16 }
 0x1d1   : >> { %v1815_v63 = vsel %vm1323_vm12, %v2793_v50, %v1740_v46  ;;  %v1589_v45 = vsel %vm1514_vm11, %v2822_v43, 0.0  ;;  %vm1513_vm1 = vcmp.eq.s32.totalorder %v1257_v4, 17  ;;  %vm1321_vm13 = vcmp.eq.s32.totalorder %v1257_v4, 0 }
 0x1d2   : >> { %1898 = vmatprep.subr.mxu0 %v1815_v63  ;;  %v1664_v5 = vsel %vm1450_vm6, %v2813_v58, %v1589_v45  ;;  %v1588_v57 = vsel %vm1513_vm1, %v2819_v59, 0.0  ;;  %vm1384_vm0 = vcmp.eq.s32.totalorder %v1256_v0, 1  ;;  %vm1448_vm3 = vcmp.eq.s32.totalorder %v1256_v0, 16 }
 0x1d3   : >> { %v1739_v16 = vsel %vm1386_vm5, %v2816_v49, %v1664_v5  ;;  %v1663_v47 = vsel %vm1449_vm10, %v2807_v54, %v1588_v57  ;;  %vm1512_vm2 = vcmp.eq.s32.totalorder %v1256_v0, 17  ;;  %vm1320_vm14 = vcmp.eq.s32.totalorder %v1256_v0, 0 }
 0x1d4   : >> { %v1814_v53 = vsel %vm1322_vm9, %v2804_v52, %v1739_v16  ;;  %v1738_v56 = vsel %vm1385_vm4, %v2810_v48, %v1663_v47  ;;  %v1587_v51 = vsel %vm1512_vm2, %v2822_v43, 0.0  ;;  %vm1383_vm15 = vcmp.eq.s32.totalorder %v1255_v60, 1 }
 0x1d5   : >> { %1899 = vmatpush1.msra.mxu0 %v1814_v53  ;;  %v1813_v4 = vsel %vm1321_vm13, %v2793_v50, %v1738_v56  ;;  %v1662_v61 = vsel %vm1448_vm3, %v2813_v58, %v1587_v51  ;;  %vm1447_vm8 = vcmp.eq.s32.totalorder %v1255_v60, 16  ;;  %vm1511_vm7 = vcmp.eq.s32.totalorder %v1255_v60, 17 }
 0x1d6   : >> { %1900 = vmatprep.subr.mxu0 %v1813_v4  ;;  %v1737_v1 = vsel %vm1384_vm0, %v2816_v49, %v1662_v61  ;;  %v1254_v3 = vsub.s32 %v2270_v8, %v2788_v62  ;;  %v1253_v46 = vsub.s32 %v2259_v7, %v2785_v55  ;;  %vm1319_vm12 = vcmp.eq.s32.totalorder %v1255_v60, 0 }
 0x1d7   : >> { %v1812_v0 = vsel %vm1320_vm14, %v2804_v52, %v1737_v1  ;;  %v1586_v63 = vsel %vm1511_vm7, %v2819_v59, 0.0  ;;  %v1252_v45 = vsub.s32 %v2259_v7, %v2788_v62  ;;  %v1251_v57 = vsub.s32 %v2256_v6, %v2785_v55 }
 0x1d8   : >> { %1901 = vmatpush1.msra.mxu0 %v1812_v0  ;;  %v1661_v5 = vsel %vm1447_vm8, %v2807_v54, %v1586_v63  ;;  %vm1318_vm9 = vcmp.eq.s32.totalorder %v1254_v3, 0  ;;  %vm1446_vm6 = vcmp.eq.s32.totalorder %v1254_v3, 16  ;;  %vm1382_vm5 = vcmp.eq.s32.totalorder %v1254_v3, 1 }
 0x1d9   : >> { %v1736_v16 = vsel %vm1383_vm15, %v2810_v48, %v1661_v5  ;;  %vm1510_vm11 = vcmp.eq.s32.totalorder %v1254_v3, 17  ;;  %vm1381_vm4 = vcmp.eq.s32.totalorder %v1253_v46, 1  ;;  %vm1445_vm10 = vcmp.eq.s32.totalorder %v1253_v46, 16 }
 0x1da   : >> { %v1811_v47 = vsel %vm1319_vm12, %v2793_v50, %v1736_v16  ;;  %v1585_v53 = vsel %vm1510_vm11, %v2822_v43, 0.0  ;;  %vm1509_vm1 = vcmp.eq.s32.totalorder %v1253_v46, 17  ;;  %vm1317_vm13 = vcmp.eq.s32.totalorder %v1253_v46, 0 }
 0x1db   : >> { %1902 = vmatprep.subr.mxu0 %v1811_v47  ;;  %v1660_v56 = vsel %vm1446_vm6, %v2813_v58, %v1585_v53  ;;  %v1584_v51 = vsel %vm1509_vm1, %v2819_v59, 0.0  ;;  %vm1380_vm0 = vcmp.eq.s32.totalorder %v1252_v45, 1  ;;  %vm1444_vm3 = vcmp.eq.s32.totalorder %v1252_v45, 16 }
 0x1dc   : >> { %v1735_v4 = vsel %vm1382_vm5, %v2816_v49, %v1660_v56  ;;  %v1659_v60 = vsel %vm1445_vm10, %v2807_v54, %v1584_v51  ;;  %vm1508_vm2 = vcmp.eq.s32.totalorder %v1252_v45, 17  ;;  %vm1316_vm14 = vcmp.eq.s32.totalorder %v1252_v45, 0 }
 0x1dd   : >> { %v1810_v61 = vsel %vm1318_vm9, %v2804_v52, %v1735_v4  ;;  %v1734_v1 = vsel %vm1381_vm4, %v2810_v48, %v1659_v60  ;;  %v1583_v0 = vsel %vm1508_vm2, %v2822_v43, 0.0  ;;  %vm1379_vm15 = vcmp.eq.s32.totalorder %v1251_v57, 1 }
 0x1de   : >> { %1903 = vmatpush1.msra.mxu0 %v1810_v61  ;;  %v1809_v46 = vsel %vm1317_vm13, %v2793_v50, %v1734_v1  ;;  %v1658_v63 = vsel %vm1444_vm3, %v2813_v58, %v1583_v0  ;;  %vm1443_vm8 = vcmp.eq.s32.totalorder %v1251_v57, 16  ;;  %vm1507_vm7 = vcmp.eq.s32.totalorder %v1251_v57, 17 }
 0x1df   : >> { %1904 = vmatprep.subr.mxu0 %v1809_v46  ;;  %v1733_v5 = vsel %vm1380_vm0, %v2816_v49, %v1658_v63  ;;  %v1250_v3 = vsub.s32 %v2256_v6, %v2788_v62  ;;  %v1313_v16 = vsub.s32 %v2373_v39, %v2785_v55  ;;  %vm1315_vm12 = vcmp.eq.s32.totalorder %v1251_v57, 0 }
 0x1e0   : >> { %v1808_v45 = vsel %vm1316_vm14, %v2804_v52, %v1733_v5  ;;  %v1582_v47 = vsel %vm1507_vm7, %v2819_v59, 0.0  ;;  %v1312_v53 = vsub.s32 %v2373_v39, %v2788_v62  ;;  %v1311_v51 = vsub.s32 %v2370_v38, %v2785_v55 }
 0x1e1   : >> { %1905 = vmatpush1.msra.mxu0 %v1808_v45  ;;  %v1657_v56 = vsel %vm1443_vm8, %v2807_v54, %v1582_v47  ;;  %vm1314_vm9 = vcmp.eq.s32.totalorder %v1250_v3, 0  ;;  %vm1442_vm6 = vcmp.eq.s32.totalorder %v1250_v3, 16  ;;  %vm1378_vm5 = vcmp.eq.s32.totalorder %v1250_v3, 1 }
 0x1e2   : >> { %v1732_v4 = vsel %vm1379_vm15, %v2810_v48, %v1657_v56  ;;  %vm1506_vm11 = vcmp.eq.s32.totalorder %v1250_v3, 17  ;;  %vm1441_vm4 = vcmp.eq.s32.totalorder %v1313_v16, 1  ;;  %vm1505_vm10 = vcmp.eq.s32.totalorder %v1313_v16, 16 }
 0x1e3   : >> { %v1807_v60 = vsel %vm1315_vm12, %v2793_v50, %v1732_v4  ;;  %v1581_v61 = vsel %vm1506_vm11, %v2822_v43, 0.0  ;;  %vm1569_vm1 = vcmp.eq.s32.totalorder %v1313_v16, 17  ;;  %vm1377_vm13 = vcmp.eq.s32.totalorder %v1313_v16, 0 }
 0x1e4   : >> { %1906 = vmatprep.subr.mxu0 %v1807_v60  ;;  %v1656_v1 = vsel %vm1442_vm6, %v2813_v58, %v1581_v61  ;;  %v1644_v0 = vsel %vm1569_vm1, %v2819_v59, 0.0  ;;  %vm1440_vm0 = vcmp.eq.s32.totalorder %v1312_v53, 1  ;;  %vm1504_vm3 = vcmp.eq.s32.totalorder %v1312_v53, 16 }
 0x1e5   : >> { %v1731_v46 = vsel %vm1378_vm5, %v2816_v49, %v1656_v1  ;;  %v1719_v57 = vsel %vm1505_vm10, %v2807_v54, %v1644_v0  ;;  %vm1568_vm2 = vcmp.eq.s32.totalorder %v1312_v53, 17  ;;  %vm1376_vm14 = vcmp.eq.s32.totalorder %v1312_v53, 0 }
 0x1e6   : >> { %v1806_v63 = vsel %vm1314_vm9, %v2804_v52, %v1731_v46  ;;  %v1794_v5 = vsel %vm1441_vm4, %v2810_v48, %v1719_v57  ;;  %v1643_v45 = vsel %vm1568_vm2, %v2822_v43, 0.0  ;;  %vm1439_vm15 = vcmp.eq.s32.totalorder %v1311_v51, 1 }
 0x1e7   : >> { %1907 = vmatpush1.msra.mxu0 %v1806_v63  ;;  %v1869_v16 = vsel %vm1377_vm13, %v2793_v50, %v1794_v5  ;;  %v1718_v47 = vsel %vm1504_vm3, %v2813_v58, %v1643_v45  ;;  %vm1503_vm8 = vcmp.eq.s32.totalorder %v1311_v51, 16  ;;  %vm1567_vm7 = vcmp.eq.s32.totalorder %v1311_v51, 17 }
 0x1e8   : >> { %1908 = vmatprep.subr.mxu0 %v1869_v16  ;;  %v1793_v56 = vsel %vm1440_vm0, %v2816_v49, %v1718_v47  ;;  %v1310_v3 = vsub.s32 %v2370_v38, %v2788_v62  ;;  %v1309_v4 = vsub.s32 %v2367_v37, %v2785_v55  ;;  %vm1375_vm12 = vcmp.eq.s32.totalorder %v1311_v51, 0 }
 0x1e9   : >> { %v1868_v53 = vsel %vm1376_vm14, %v2804_v52, %v1793_v56  ;;  %v1642_v60 = vsel %vm1567_vm7, %v2819_v59, 0.0  ;;  %v1308_v61 = vsub.s32 %v2367_v37, %v2788_v62  ;;  %v1307_v0 = vsub.s32 %v2364_v36, %v2785_v55 }
 0x1ea   : >> { %1909 = vmatpush2.msra.mxu0 %v1868_v53  ;;  %v1717_v1 = vsel %vm1503_vm8, %v2807_v54, %v1642_v60  ;;  %vm1374_vm9 = vcmp.eq.s32.totalorder %v1310_v3, 0  ;;  %vm1502_vm6 = vcmp.eq.s32.totalorder %v1310_v3, 16  ;;  %vm1438_vm5 = vcmp.eq.s32.totalorder %v1310_v3, 1 }
 0x1eb   : >> { %v1792_v46 = vsel %vm1439_vm15, %v2810_v48, %v1717_v1  ;;  %vm1566_vm11 = vcmp.eq.s32.totalorder %v1310_v3, 17  ;;  %vm1437_vm4 = vcmp.eq.s32.totalorder %v1309_v4, 1  ;;  %vm1501_vm10 = vcmp.eq.s32.totalorder %v1309_v4, 16 }
 0x1ec   : >> { %v1867_v57 = vsel %vm1375_vm12, %v2793_v50, %v1792_v46  ;;  %v1641_v63 = vsel %vm1566_vm11, %v2822_v43, 0.0  ;;  %vm1565_vm1 = vcmp.eq.s32.totalorder %v1309_v4, 17  ;;  %vm1373_vm13 = vcmp.eq.s32.totalorder %v1309_v4, 0 }
 0x1ed   : >> { %1910 = vmatprep.subr.mxu0 %v1867_v57  ;;  %v1716_v5 = vsel %vm1502_vm6, %v2813_v58, %v1641_v63  ;;  %v1640_v45 = vsel %vm1565_vm1, %v2819_v59, 0.0  ;;  %vm1436_vm0 = vcmp.eq.s32.totalorder %v1308_v61, 1  ;;  %vm1500_vm3 = vcmp.eq.s32.totalorder %v1308_v61, 16 }
 0x1ee   : >> { %v1791_v16 = vsel %vm1438_vm5, %v2816_v49, %v1716_v5  ;;  %v1715_v51 = vsel %vm1501_vm10, %v2807_v54, %v1640_v45  ;;  %vm1564_vm2 = vcmp.eq.s32.totalorder %v1308_v61, 17  ;;  %vm1372_vm14 = vcmp.eq.s32.totalorder %v1308_v61, 0 }
 0x1ef   : >> { %v1866_v47 = vsel %vm1374_vm9, %v2804_v52, %v1791_v16  ;;  %v1790_v56 = vsel %vm1437_vm4, %v2810_v48, %v1715_v51  ;;  %v1639_v53 = vsel %vm1564_vm2, %v2822_v43, 0.0  ;;  %vm1435_vm15 = vcmp.eq.s32.totalorder %v1307_v0, 1 }
 0x1f0   : >> { %1911 = vmatpush2.msra.mxu0 %v1866_v47  ;;  %v1865_v4 = vsel %vm1373_vm13, %v2793_v50, %v1790_v56  ;;  %v1714_v60 = vsel %vm1500_vm3, %v2813_v58, %v1639_v53  ;;  %vm1499_vm8 = vcmp.eq.s32.totalorder %v1307_v0, 16  ;;  %vm1563_vm7 = vcmp.eq.s32.totalorder %v1307_v0, 17 }
 0x1f1   : >> { %1912 = vmatprep.subr.mxu0 %v1865_v4  ;;  %v1789_v1 = vsel %vm1436_vm0, %v2816_v49, %v1714_v60  ;;  %v1306_v3 = vsub.s32 %v2364_v36, %v2788_v62  ;;  %v1305_v46 = vsub.s32 %v2361_v35, %v2785_v55  ;;  %vm1371_vm12 = vcmp.eq.s32.totalorder %v1307_v0, 0 }
 0x1f2   : >> { %v1864_v61 = vsel %vm1372_vm14, %v2804_v52, %v1789_v1  ;;  %v1638_v57 = vsel %vm1563_vm7, %v2819_v59, 0.0  ;;  %v1304_v63 = vsub.s32 %v2361_v35, %v2788_v62  ;;  %v1303_v45 = vsub.s32 %v2358_v34, %v2785_v55 }
 0x1f3   : >> { %1913 = vmatpush2.msra.mxu0 %v1864_v61  ;;  %v1713_v5 = vsel %vm1499_vm8, %v2807_v54, %v1638_v57  ;;  %vm1370_vm9 = vcmp.eq.s32.totalorder %v1306_v3, 0  ;;  %vm1498_vm6 = vcmp.eq.s32.totalorder %v1306_v3, 16  ;;  %vm1434_vm5 = vcmp.eq.s32.totalorder %v1306_v3, 1 }
 0x1f4   : >> { %v1788_v16 = vsel %vm1435_vm15, %v2810_v48, %v1713_v5  ;;  %vm1562_vm11 = vcmp.eq.s32.totalorder %v1306_v3, 17  ;;  %vm1433_vm4 = vcmp.eq.s32.totalorder %v1305_v46, 1  ;;  %vm1497_vm10 = vcmp.eq.s32.totalorder %v1305_v46, 16 }
 0x1f5   : >> { %v1863_v51 = vsel %vm1371_vm12, %v2793_v50, %v1788_v16  ;;  %v1637_v47 = vsel %vm1562_vm11, %v2822_v43, 0.0  ;;  %vm1561_vm1 = vcmp.eq.s32.totalorder %v1305_v46, 17  ;;  %vm1369_vm13 = vcmp.eq.s32.totalorder %v1305_v46, 0 }
 0x1f6   : >> { %1914 = vmatprep.subr.mxu0 %v1863_v51  ;;  %v1712_v56 = vsel %vm1498_vm6, %v2813_v58, %v1637_v47  ;;  %v1636_v53 = vsel %vm1561_vm1, %v2819_v59, 0.0  ;;  %vm1432_vm0 = vcmp.eq.s32.totalorder %v1304_v63, 1  ;;  %vm1496_vm3 = vcmp.eq.s32.totalorder %v1304_v63, 16 }
 0x1f7   : >> { %v1787_v4 = vsel %vm1434_vm5, %v2816_v49, %v1712_v56  ;;  %v1711_v0 = vsel %vm1497_vm10, %v2807_v54, %v1636_v53  ;;  %vm1560_vm2 = vcmp.eq.s32.totalorder %v1304_v63, 17  ;;  %vm1368_vm14 = vcmp.eq.s32.totalorder %v1304_v63, 0 }
 0x1f8   : >> { %v1862_v60 = vsel %vm1370_vm9, %v2804_v52, %v1787_v4  ;;  %v1786_v1 = vsel %vm1433_vm4, %v2810_v48, %v1711_v0  ;;  %v1635_v61 = vsel %vm1560_vm2, %v2822_v43, 0.0  ;;  %vm1431_vm15 = vcmp.eq.s32.totalorder %v1303_v45, 1 }
 0x1f9   : >> { %1915 = vmatpush2.msra.mxu0 %v1862_v60  ;;  %v1861_v46 = vsel %vm1369_vm13, %v2793_v50, %v1786_v1  ;;  %v1710_v57 = vsel %vm1496_vm3, %v2813_v58, %v1635_v61  ;;  %vm1495_vm8 = vcmp.eq.s32.totalorder %v1303_v45, 16  ;;  %vm1559_vm7 = vcmp.eq.s32.totalorder %v1303_v45, 17 }
 0x1fa   : >> { %1916 = vmatprep.subr.mxu0 %v1861_v46  ;;  %v1785_v5 = vsel %vm1432_vm0, %v2816_v49, %v1710_v57  ;;  %v1302_v3 = vsub.s32 %v2358_v34, %v2788_v62  ;;  %v1301_v16 = vsub.s32 %v2355_v33, %v2785_v55  ;;  %vm1367_vm12 = vcmp.eq.s32.totalorder %v1303_v45, 0 }
 0x1fb   : >> { %v1860_v63 = vsel %vm1368_vm14, %v2804_v52, %v1785_v5  ;;  %v1634_v51 = vsel %vm1559_vm7, %v2819_v59, 0.0  ;;  %v1300_v47 = vsub.s32 %v2355_v33, %v2788_v62  ;;  %v1299_v53 = vsub.s32 %v2352_v32, %v2785_v55 }
 0x1fc   : >> { %1917 = vmatpush2.msra.mxu0 %v1860_v63  ;;  %v1709_v56 = vsel %vm1495_vm8, %v2807_v54, %v1634_v51  ;;  %vm1366_vm9 = vcmp.eq.s32.totalorder %v1302_v3, 0  ;;  %vm1494_vm6 = vcmp.eq.s32.totalorder %v1302_v3, 16  ;;  %vm1430_vm5 = vcmp.eq.s32.totalorder %v1302_v3, 1 }
 0x1fd   : >> { %v1784_v4 = vsel %vm1431_vm15, %v2810_v48, %v1709_v56  ;;  %vm1558_vm11 = vcmp.eq.s32.totalorder %v1302_v3, 17  ;;  %vm1429_vm4 = vcmp.eq.s32.totalorder %v1301_v16, 1  ;;  %vm1493_vm10 = vcmp.eq.s32.totalorder %v1301_v16, 16 }
 0x1fe   : >> { %v1859_v0 = vsel %vm1367_vm12, %v2793_v50, %v1784_v4  ;;  %v1633_v60 = vsel %vm1558_vm11, %v2822_v43, 0.0  ;;  %vm1557_vm1 = vcmp.eq.s32.totalorder %v1301_v16, 17  ;;  %vm1365_vm13 = vcmp.eq.s32.totalorder %v1301_v16, 0 }
 0x1ff   : >> { %1918 = vmatprep.subr.mxu0 %v1859_v0  ;;  %v1708_v1 = vsel %vm1494_vm6, %v2813_v58, %v1633_v60  ;;  %v1632_v61 = vsel %vm1557_vm1, %v2819_v59, 0.0  ;;  %vm1428_vm0 = vcmp.eq.s32.totalorder %v1300_v47, 1  ;;  %vm1492_vm3 = vcmp.eq.s32.totalorder %v1300_v47, 16 }
 0x200   : >> { %v1783_v46 = vsel %vm1430_vm5, %v2816_v49, %v1708_v1  ;;  %v1707_v45 = vsel %vm1493_vm10, %v2807_v54, %v1632_v61  ;;  %vm1556_vm2 = vcmp.eq.s32.totalorder %v1300_v47, 17  ;;  %vm1364_vm14 = vcmp.eq.s32.totalorder %v1300_v47, 0 }
 0x201   : >> { %v1858_v57 = vsel %vm1366_vm9, %v2804_v52, %v1783_v46  ;;  %v1782_v5 = vsel %vm1429_vm4, %v2810_v48, %v1707_v45  ;;  %v1631_v63 = vsel %vm1556_vm2, %v2822_v43, 0.0  ;;  %vm1427_vm15 = vcmp.eq.s32.totalorder %v1299_v53, 1 }
 0x202   : >> { %1919 = vmatpush2.msra.mxu0 %v1858_v57  ;;  %v1857_v16 = vsel %vm1365_vm13, %v2793_v50, %v1782_v5  ;;  %v1706_v51 = vsel %vm1492_vm3, %v2813_v58, %v1631_v63  ;;  %vm1491_vm8 = vcmp.eq.s32.totalorder %v1299_v53, 16  ;;  %vm1555_vm7 = vcmp.eq.s32.totalorder %v1299_v53, 17 }
 0x203   : >> { %1920 = vmatprep.subr.mxu0 %v1857_v16  ;;  %v1781_v56 = vsel %vm1428_vm0, %v2816_v49, %v1706_v51  ;;  %v1298_v3 = vsub.s32 %v2352_v32, %v2788_v62  ;;  %v1297_v4 = vsub.s32 %v2349_v31, %v2785_v55  ;;  %vm1363_vm12 = vcmp.eq.s32.totalorder %v1299_v53, 0 }
 0x204   : >> { %v1856_v47 = vsel %vm1364_vm14, %v2804_v52, %v1781_v56  ;;  %v1630_v0 = vsel %vm1555_vm7, %v2819_v59, 0.0  ;;  %v1296_v60 = vsub.s32 %v2349_v31, %v2788_v62  ;;  %v1295_v61 = vsub.s32 %v2346_v30, %v2785_v55 }
 0x205   : >> { %1921 = vmatpush2.msra.mxu0 %v1856_v47  ;;  %v1705_v1 = vsel %vm1491_vm8, %v2807_v54, %v1630_v0  ;;  %vm1362_vm9 = vcmp.eq.s32.totalorder %v1298_v3, 0  ;;  %vm1490_vm6 = vcmp.eq.s32.totalorder %v1298_v3, 16  ;;  %vm1426_vm5 = vcmp.eq.s32.totalorder %v1298_v3, 1 }
 0x206   : >> { %v1780_v46 = vsel %vm1427_vm15, %v2810_v48, %v1705_v1  ;;  %vm1554_vm11 = vcmp.eq.s32.totalorder %v1298_v3, 17  ;;  %vm1425_vm4 = vcmp.eq.s32.totalorder %v1297_v4, 1  ;;  %vm1489_vm10 = vcmp.eq.s32.totalorder %v1297_v4, 16 }
 0x207   : >> { %v1855_v45 = vsel %vm1363_vm12, %v2793_v50, %v1780_v46  ;;  %v1629_v57 = vsel %vm1554_vm11, %v2822_v43, 0.0  ;;  %vm1553_vm1 = vcmp.eq.s32.totalorder %v1297_v4, 17  ;;  %vm1361_vm13 = vcmp.eq.s32.totalorder %v1297_v4, 0 }
 0x208   : >> { %1922 = vmatprep.subr.mxu0 %v1855_v45  ;;  %v1704_v5 = vsel %vm1490_vm6, %v2813_v58, %v1629_v57  ;;  %v1628_v63 = vsel %vm1553_vm1, %v2819_v59, 0.0  ;;  %vm1424_vm0 = vcmp.eq.s32.totalorder %v1296_v60, 1  ;;  %vm1488_vm3 = vcmp.eq.s32.totalorder %v1296_v60, 16 }
 0x209   : >> { %v1779_v16 = vsel %vm1426_vm5, %v2816_v49, %v1704_v5  ;;  %v1703_v53 = vsel %vm1489_vm10, %v2807_v54, %v1628_v63  ;;  %vm1552_vm2 = vcmp.eq.s32.totalorder %v1296_v60, 17  ;;  %vm1360_vm14 = vcmp.eq.s32.totalorder %v1296_v60, 0 }
 0x20a   : >> { %v1854_v51 = vsel %vm1362_vm9, %v2804_v52, %v1779_v16  ;;  %v1778_v56 = vsel %vm1425_vm4, %v2810_v48, %v1703_v53  ;;  %v1627_v47 = vsel %vm1552_vm2, %v2822_v43, 0.0  ;;  %vm1423_vm15 = vcmp.eq.s32.totalorder %v1295_v61, 1 }
 0x20b   : >> { %1923 = vmatpush2.msra.mxu0 %v1854_v51  ;;  %v1853_v4 = vsel %vm1361_vm13, %v2793_v50, %v1778_v56  ;;  %v1702_v0 = vsel %vm1488_vm3, %v2813_v58, %v1627_v47  ;;  %vm1487_vm8 = vcmp.eq.s32.totalorder %v1295_v61, 16  ;;  %vm1551_vm7 = vcmp.eq.s32.totalorder %v1295_v61, 17 }
 0x20c   : >> { %1924 = vmatprep.subr.mxu0 %v1853_v4  ;;  %v1777_v1 = vsel %vm1424_vm0, %v2816_v49, %v1702_v0  ;;  %v1294_v3 = vsub.s32 %v2346_v30, %v2788_v62  ;;  %v1293_v46 = vsub.s32 %v2343_v29, %v2785_v55  ;;  %vm1359_vm12 = vcmp.eq.s32.totalorder %v1295_v61, 0 }
 0x20d   : >> { %v1852_v60 = vsel %vm1360_vm14, %v2804_v52, %v1777_v1  ;;  %v1626_v45 = vsel %vm1551_vm7, %v2819_v59, 0.0  ;;  %v1292_v57 = vsub.s32 %v2343_v29, %v2788_v62  ;;  %v1291_v63 = vsub.s32 %v2335_v28, %v2785_v55 }
 0x20e   : >> { %1925 = vmatpush2.msra.mxu0 %v1852_v60  ;;  %v1701_v5 = vsel %vm1487_vm8, %v2807_v54, %v1626_v45  ;;  %vm1358_vm9 = vcmp.eq.s32.totalorder %v1294_v3, 0  ;;  %vm1486_vm6 = vcmp.eq.s32.totalorder %v1294_v3, 16  ;;  %vm1422_vm5 = vcmp.eq.s32.totalorder %v1294_v3, 1 }
 0x20f   : >> { %v1776_v16 = vsel %vm1423_vm15, %v2810_v48, %v1701_v5  ;;  %vm1550_vm11 = vcmp.eq.s32.totalorder %v1294_v3, 17  ;;  %vm1421_vm4 = vcmp.eq.s32.totalorder %v1293_v46, 1  ;;  %vm1485_vm10 = vcmp.eq.s32.totalorder %v1293_v46, 16 }
 0x210   : >> { %v1851_v53 = vsel %vm1359_vm12, %v2793_v50, %v1776_v16  ;;  %v1625_v51 = vsel %vm1550_vm11, %v2822_v43, 0.0  ;;  %vm1549_vm1 = vcmp.eq.s32.totalorder %v1293_v46, 17  ;;  %vm1357_vm13 = vcmp.eq.s32.totalorder %v1293_v46, 0 }
 0x211   : >> { %1926 = vmatprep.subr.mxu0 %v1851_v53  ;;  %v1700_v56 = vsel %vm1486_vm6, %v2813_v58, %v1625_v51  ;;  %v1624_v47 = vsel %vm1549_vm1, %v2819_v59, 0.0  ;;  %vm1420_vm0 = vcmp.eq.s32.totalorder %v1292_v57, 1  ;;  %vm1484_vm3 = vcmp.eq.s32.totalorder %v1292_v57, 16 }
 0x212   : >> { %v1775_v4 = vsel %vm1422_vm5, %v2816_v49, %v1700_v56  ;;  %v1699_v61 = vsel %vm1485_vm10, %v2807_v54, %v1624_v47  ;;  %vm1548_vm2 = vcmp.eq.s32.totalorder %v1292_v57, 17  ;;  %vm1356_vm14 = vcmp.eq.s32.totalorder %v1292_v57, 0 }
 0x213   : >> { %v1850_v0 = vsel %vm1358_vm9, %v2804_v52, %v1775_v4  ;;  %v1774_v1 = vsel %vm1421_vm4, %v2810_v48, %v1699_v61  ;;  %v1623_v60 = vsel %vm1548_vm2, %v2822_v43, 0.0  ;;  %vm1419_vm15 = vcmp.eq.s32.totalorder %v1291_v63, 1 }
 0x214   : >> { %1927 = vmatpush2.msra.mxu0 %v1850_v0  ;;  %v1849_v46 = vsel %vm1357_vm13, %v2793_v50, %v1774_v1  ;;  %v1698_v45 = vsel %vm1484_vm3, %v2813_v58, %v1623_v60  ;;  %vm1483_vm8 = vcmp.eq.s32.totalorder %v1291_v63, 16  ;;  %vm1547_vm7 = vcmp.eq.s32.totalorder %v1291_v63, 17 }
 0x215   : >> { %1928 = vmatprep.subr.mxu0 %v1849_v46  ;;  %v1773_v5 = vsel %vm1420_vm0, %v2816_v49, %v1698_v45  ;;  %v1290_v3 = vsub.s32 %v2335_v28, %v2788_v62  ;;  %v1289_v16 = vsub.s32 %v2332_v27, %v2785_v55  ;;  %vm1355_vm12 = vcmp.eq.s32.totalorder %v1291_v63, 0 }
 0x216   : >> { %v1848_v57 = vsel %vm1356_vm14, %v2804_v52, %v1773_v5  ;;  %v1622_v53 = vsel %vm1547_vm7, %v2819_v59, 0.0  ;;  %v1288_v51 = vsub.s32 %v2332_v27, %v2788_v62  ;;  %v1287_v47 = vsub.s32 %v2329_v26, %v2785_v55 }
 0x217   : >> { %1929 = vmatpush2.msra.mxu0 %v1848_v57  ;;  %v1697_v56 = vsel %vm1483_vm8, %v2807_v54, %v1622_v53  ;;  %vm1354_vm9 = vcmp.eq.s32.totalorder %v1290_v3, 0  ;;  %vm1482_vm6 = vcmp.eq.s32.totalorder %v1290_v3, 16  ;;  %vm1418_vm5 = vcmp.eq.s32.totalorder %v1290_v3, 1 }
 0x218   : >> { %v1772_v4 = vsel %vm1419_vm15, %v2810_v48, %v1697_v56  ;;  %vm1546_vm11 = vcmp.eq.s32.totalorder %v1290_v3, 17  ;;  %vm1417_vm4 = vcmp.eq.s32.totalorder %v1289_v16, 1  ;;  %vm1481_vm10 = vcmp.eq.s32.totalorder %v1289_v16, 16 }
 0x219   : >> { %v1847_v61 = vsel %vm1355_vm12, %v2793_v50, %v1772_v4  ;;  %v1621_v0 = vsel %vm1546_vm11, %v2822_v43, 0.0  ;;  %vm1545_vm1 = vcmp.eq.s32.totalorder %v1289_v16, 17  ;;  %vm1353_vm13 = vcmp.eq.s32.totalorder %v1289_v16, 0 }
 0x21a   : >> { %1930 = vmatprep.subr.mxu0 %v1847_v61  ;;  %v1696_v1 = vsel %vm1482_vm6, %v2813_v58, %v1621_v0  ;;  %v1620_v60 = vsel %vm1545_vm1, %v2819_v59, 0.0  ;;  %vm1416_vm0 = vcmp.eq.s32.totalorder %v1288_v51, 1  ;;  %vm1480_vm3 = vcmp.eq.s32.totalorder %v1288_v51, 16 }
 0x21b   : >> { %v1771_v46 = vsel %vm1418_vm5, %v2816_v49, %v1696_v1  ;;  %v1695_v63 = vsel %vm1481_vm10, %v2807_v54, %v1620_v60  ;;  %vm1544_vm2 = vcmp.eq.s32.totalorder %v1288_v51, 17  ;;  %vm1352_vm14 = vcmp.eq.s32.totalorder %v1288_v51, 0 }
 0x21c   : >> { %v1846_v45 = vsel %vm1354_vm9, %v2804_v52, %v1771_v46  ;;  %v1770_v5 = vsel %vm1417_vm4, %v2810_v48, %v1695_v63  ;;  %v1619_v57 = vsel %vm1544_vm2, %v2822_v43, 0.0  ;;  %vm1415_vm15 = vcmp.eq.s32.totalorder %v1287_v47, 1 }
 0x21d   : >> { %1931 = vmatpush2.msra.mxu0 %v1846_v45  ;;  %v1845_v16 = vsel %vm1353_vm13, %v2793_v50, %v1770_v5  ;;  %v1694_v53 = vsel %vm1480_vm3, %v2813_v58, %v1619_v57  ;;  %vm1479_vm8 = vcmp.eq.s32.totalorder %v1287_v47, 16  ;;  %vm1543_vm7 = vcmp.eq.s32.totalorder %v1287_v47, 17 }
 0x21e   : >> { %1932 = vmatprep.subr.mxu0 %v1845_v16  ;;  %v1769_v56 = vsel %vm1416_vm0, %v2816_v49, %v1694_v53  ;;  %v1286_v3 = vsub.s32 %v2329_v26, %v2788_v62  ;;  %v1285_v4 = vsub.s32 %v2324_v25, %v2785_v55  ;;  %vm1351_vm12 = vcmp.eq.s32.totalorder %v1287_v47, 0  ;;  %v1872_v16 = vld [vmem:[%s1871_s12] sm:$0xff] }
 0x21f   : >> { %v1844_v51 = vsel %vm1352_vm14, %v2804_v52, %v1769_v56  ;;  %v1618_v61 = vsel %vm1543_vm7, %v2819_v59, 0.0  ;;  %v1284_v0 = vsub.s32 %v2324_v25, %v2788_v62  ;;  %v1283_v60 = vsub.s32 %v2321_v24, %v2785_v55 }
 0x220   : >> { %1933 = vmatpush2.msra.mxu0 %v1844_v51  ;;  %v1693_v1 = vsel %vm1479_vm8, %v2807_v54, %v1618_v61  ;;  %vm1350_vm9 = vcmp.eq.s32.totalorder %v1286_v3, 0  ;;  %vm1478_vm6 = vcmp.eq.s32.totalorder %v1286_v3, 16  ;;  %vm1414_vm5 = vcmp.eq.s32.totalorder %v1286_v3, 1 }
 0x221   : >> { %v1768_v46 = vsel %vm1415_vm15, %v2810_v48, %v1693_v1  ;;  %vm1542_vm11 = vcmp.eq.s32.totalorder %v1286_v3, 17  ;;  %vm1413_vm4 = vcmp.eq.s32.totalorder %v1285_v4, 1  ;;  %vm1477_vm10 = vcmp.eq.s32.totalorder %v1285_v4, 16 }
 0x222   : >> { %v1843_v63 = vsel %vm1351_vm12, %v2793_v50, %v1768_v46  ;;  %v1617_v45 = vsel %vm1542_vm11, %v2822_v43, 0.0  ;;  %vm1541_vm1 = vcmp.eq.s32.totalorder %v1285_v4, 17  ;;  %vm1349_vm13 = vcmp.eq.s32.totalorder %v1285_v4, 0 }
 0x223   : >> { %1934 = vmatprep.subr.mxu0 %v1843_v63  ;;  %v1692_v5 = vsel %vm1478_vm6, %v2813_v58, %v1617_v45  ;;  %v1616_v57 = vsel %vm1541_vm1, %v2819_v59, 0.0  ;;  %vm1412_vm0 = vcmp.eq.s32.totalorder %v1284_v0, 1  ;;  %vm1476_vm3 = vcmp.eq.s32.totalorder %v1284_v0, 16 }
 0x224   : >> { %v1767_v55 = vsel %vm1414_vm5, %v2816_v49, %v1692_v5  ;;  %v1691_v47 = vsel %vm1477_vm10, %v2807_v54, %v1616_v57  ;;  %vm1540_vm2 = vcmp.eq.s32.totalorder %v1284_v0, 17  ;;  %vm1348_vm14 = vcmp.eq.s32.totalorder %v1284_v0, 0 }
 0x225   : >> { %v1842_v53 = vsel %vm1350_vm9, %v2804_v52, %v1767_v55  ;;  %v1766_v56 = vsel %vm1413_vm4, %v2810_v48, %v1691_v47  ;;  %v1615_v51 = vsel %vm1540_vm2, %v2822_v43, 0.0  ;;  %vm1411_vm15 = vcmp.eq.s32.totalorder %v1283_v60, 1 }
 0x226   : >> { %1935 = vmatpush2.msra.mxu0 %v1842_v53  ;;  %v1841_v61 = vsel %vm1349_vm13, %v2793_v50, %v1766_v56  ;;  %v1690_v1 = vsel %vm1476_vm3, %v2813_v58, %v1615_v51  ;;  %vm1475_vm8 = vcmp.eq.s32.totalorder %v1283_v60, 16  ;;  %vm1539_vm7 = vcmp.eq.s32.totalorder %v1283_v60, 17 }
 0x227   : >> { %1936 = vmatprep.subr.mxu0 %v1841_v61  ;;  %v1765_v46 = vsel %vm1412_vm0, %v2816_v49, %v1690_v1  ;;  %v1282_v3 = vsub.s32 %v2321_v24, %v2788_v62  ;;  %v1874_v4 = vcombine.high %v1872_v16, %v1872_v16  ;;  %vm1347_vm12 = vcmp.eq.s32.totalorder %v1283_v60, 0 }
 0x228   : >> { %v1840_v63 = vsel %vm1348_vm14, %v2804_v52, %v1765_v46  ;;  %v1614_v45 = vsel %vm1539_vm7, %v2819_v59, 0.0 }
 0x229   : >> { %1937 = vmatpush2.msra.mxu0 %v1840_v63  ;;  %v1689_v5 = vsel %vm1475_vm8, %v2807_v54, %v1614_v45  ;;  %vm1474_vm9 = vcmp.eq.s32.totalorder %v1282_v3, 16  ;;  %1940 = vmatprep.mubr.f32.mxu0 %v1874_v4  ;;  %vm1410_vm6 = vcmp.eq.s32.totalorder %v1282_v3, 1  ;;  %vm1538_vm5 = vcmp.eq.s32.totalorder %v1282_v3, 17 }
 0x22a   : >> { %v1764_v57 = vsel %vm1411_vm15, %v2810_v48, %v1689_v5  ;;  %vm1346_vm11 = vcmp.eq.s32.totalorder %v1282_v3, 0  ;;  %v1613_v62 = vsel %vm1538_vm5, %v2822_v43, 0.0 }
 0x22b   : >> { %v1839_v0 = vsel %vm1347_vm12, %v2793_v50, %v1764_v57  ;;  %v1688_v55 = vsel %vm1474_vm9, %v2813_v58, %v1613_v62  ;;  %v3351_v50 = vmov (%p1195_p4), 0  }
 0x22c   : >> { %1938 = vmatprep.subr.mxu0 %v1839_v0  ;;  %v1763_v60 = vsel %vm1410_vm6, %v2816_v49, %v1688_v55  ;;  %2136 = vset.pattern.permute.xlu0 (%p1195_p4), %v3351_v50 }
 0x22d   : >> { %v1838_v59 = vsel %vm1346_vm11, %v2804_v52, %v1763_v60  ;;  %v1949_v52 = vld [vmem:[%s3268_s6] sm:$0xf] (%p1195_p4) }
 0x22e   : >> { %1939 = vmatpush2.msra.mxu0 %v1838_v59  ;;  %1952 = vperm.xlu0 (%p1195_p4), %2136, %v1949_v52  }
 0x22f   : >> { %1941 = vmatmul.mubr.f32.vlgmr.msra.gmra.mxu0 %v1872_v16 }
 0x2a9   : > { %v1953_v58 = vpop.permute.xlu0 (%p1195_p4), %1952 }
 0x2ef   : >> { %v1942_v54 = vpop.f32.mrf.mxu0 }
 0x2f0   : >> { %v1947_v47 = vadd.f32 %v2171_v44, %v1942_v54   ;;  %1197 = sbr.rel (!%p1195_p4) target bundleno = 388 (0x184), region = 116 }
 0x2f1   : >> { %v1944_v48 = vpop.f32.mrf.mxu0 }
 0x2f2   : >> { %v1948_v53 = vadd.f32 %v2167_v40, %v1944_v48   ;;  %v3350_v44 = vmov %v1947_v47  ;;  %v1955_v49 = vmul.f32 (%p1195_p4), %v1953_v58, %v1947_v47 }
 0x2f3   : > { %v1957_v44 = vld [vmem:[%s3269_s7] sm:$0xf] (%p1195_p4) }
 0x2f4   : >> { %v3349_v40 = vmov %v1948_v53  ;;  %1960 = vperm.xlu0 (%p1195_p4), %2136, %v1957_v44   ;;  %v1956_v43 = vmul.f32 (%p1195_p4), %v1953_v58, %v1948_v53 }
 0x36f   : > { %v1961_v16 = vpop.permute.xlu0 %1960 }
 0x370   : > { %v1963_v56 = vadd.f32 %v1961_v16, %v1955_v49  ;;  %v1964_v51 = vadd.f32 %v1961_v16, %v1956_v43 }
 0x372   : > { %v2078_v61 = vmul.f32 -1.442695, %v1963_v56  ;;  %v2079_v2 = vmul.f32 -1.442695, %v1964_v51 }
 0x374   : > { %2137 = vpow2.f32 %v2078_v61 }
 0x375   : > { %2139 = vpow2.f32 %v2079_v2 }
 0x381   : > { %v2138_v6 = vpop.eup %2137 }
 0x382   : > { %v2140_v7 = vpop.eup %2139  ;;  %v1971_v8 = vadd.f32 1.0, %v2138_v6 }
 0x383   : > { %v1972_v9 = vadd.f32 1.0, %v2140_v7 }
 0x384   : > { %2141 = vrcp.f32 %v1971_v8 }
 0x385   : > { %2143 = vrcp.f32 %v1972_v9 }
 0x391   : > { %v2142_v10 = vpop.eup %2141 }
 0x392   : > { %v2144_v11 = vpop.eup %2143 }
 0x393   : > { %v1979_v13 = vcombine.low %v2142_v10, %v2144_v11 }
 0x395   : > { %v1981_v14 = vmul.f32 %v1979_v13, %v2281_v12 }
 0x397   : > { %1982 = vst [vmem:[%s2267_s17] sm:$0xff] %v1981_v14 }
 0x398 PF: > { %s18_s27 = sadd.s32 1, %s2163_s27  }
 0x399   : > { %p15_p5 = scmp.ge.s32.totalorder %s18_s27, 4  }
 0x39b   :  { %17 = sbr.rel (!%p15_p5) target bundleno = 1 (0x1), region = 127 }

</bundles_post_ra>
